<compile_context>
chip_gen: v7x
topology: tpu7x:2x2x1
jax: 0.10.0
libtpu: 0.0.40
codegen_flags: <defaults>
</compile_context>

<pallas_src>
import numpy as np

import jax
import jax.numpy as jnp
from jax.experimental import pallas as pl
from jax.experimental.pallas import tpu as pltpu


# ---------------------------------------------------------------------------
# Fused kernel: whole network in one program (grid=(1,), everything in VMEM)
# ---------------------------------------------------------------------------
def _dqn_kernel(xcol_ref, w1_ref, b1_ref, w2_ref, b2_ref,
                w3_ref, b3_ref, w4_ref, b4_ref, o_ref):
    B = o_ref.shape[0]
    wdt = w1_ref.dtype                      # matmul operand dtype (f32 or bf16)
    K3 = w2_ref.shape[1]                    # 192 = lanes per h_out block

    # ---- conv1 + BN1 + ReLU: one MXU matmul, dense 896-lane epilogue -------
    # xcol rows = (h_out_pair, b); lanes = 6 input rows x 16 cols of x.
    y1 = jnp.dot(xcol_ref[...].astype(wdt), w1_ref[...],
                 preferred_element_type=jnp.float32)            # [4B, 896]
    y1 = jnp.maximum(y1 + b1_ref[...], 0.0)

    # ---- conv2 + BN2 + ReLU: one MXU matmul (stride-2 im2col is in W2) ------
    y2 = jnp.dot(y1.astype(wdt), w2_ref[...],
                 preferred_element_type=jnp.float32)            # [4B, 192]
    y2 = jnp.maximum(y2 + b2_ref[...], 0.0)

    # ---- flatten + linear1 + ReLU ------------------------------------------
    # The flatten's h_out dimension lives on the ROW axis of y2, so linear1
    # is computed as 4 accumulated matmuls, one per h_out row-block.  No lane
    # concatenations, no masked stores, no scratch.
    z1 = jnp.zeros((B, w3_ref.shape[1]), jnp.float32)           # [B, 256]
    for ho in range(4):
        z1 = z1 + jnp.dot(y2[ho * B:(ho + 1) * B, :].astype(wdt),
                          w3_ref[ho * K3:(ho + 1) * K3, :],
                          preferred_element_type=jnp.float32)
    z1 = jnp.maximum(z1 + b3_ref[...], 0.0)

    # ---- head (output padded to 128 lanes -> unmasked lane-dense store) ----
    zh = jnp.dot(z1.astype(wdt), w4_ref[...],
                 preferred_element_type=jnp.float32)            # [B, 128]
    o_ref[...] = zh + b4_ref[...]


def _full_spec(shape):
    nd = len(shape)
    return pl.BlockSpec(shape, lambda *_: (0,) * nd)


def _build_call(B, prep):
    args = (("xcol", (4 * B, 96)),
            ("W1", prep["W1"].shape), ("b1", prep["b1"].shape),
            ("W2", prep["W2"].shape), ("b2", prep["b2"].shape),
            ("W3", prep["W3"].shape), ("b3", prep["b3"].shape),
            ("W4", prep["W4"].shape), ("b4", prep["b4"].shape))
    return pl.pallas_call(
        _dqn_kernel,
        out_shape=jax.ShapeDtypeStruct((B, 128), jnp.float32),
        grid=(1,),
        in_specs=[_full_spec(s) for _, s in args],
        out_specs=_full_spec((B, 128)),
        compiler_params=pltpu.CompilerParams(
            # Single grid step on one TensorCore; total VMEM footprint is a
            # couple of MiB so no vmem_limit override is needed.
            dimension_semantics=("arbitrary",)),
    )


# ---------------------------------------------------------------------------
# One-time parameter preprocessing (hoisted out of the per-forward path)
# ---------------------------------------------------------------------------
def prepare_params(p, eps=1e-5, weight_dtype=jnp.float32):
    f32 = np.float32
    w1 = np.asarray(p["w1"], f32)            # [16, 1, 3, 3]
    w2 = np.asarray(p["w2"], f32)            # [32, 16, 4, 4]
    lw1 = np.asarray(p["lw1"], f32)          # [256, 768]
    hw = np.asarray(p["hw"], f32)            # [7, 256]

    s1 = np.asarray(p["g1"], f32) / np.sqrt(np.asarray(p["v1"], f32) + eps)
    s2 = np.asarray(p["g2"], f32) / np.sqrt(np.asarray(p["v2"], f32) + eps)
    bvec1 = (np.asarray(p["b1"], f32) - np.asarray(p["m1"], f32)) * s1 \
        + np.asarray(p["be1"], f32)                                    # [16]
    bvec2 = (np.asarray(p["b2"], f32) - np.asarray(p["m2"], f32)) * s2 \
        + np.asarray(p["be2"], f32)                                    # [32]

    # W1 [96, 896]: conv1 over a 6-row input window, BN1 scale folded.
    #   k = r_in*16 + w_in            (r_in = row within the 6-row window)
    #   n = (dh*14 + w_out)*16 + c    (dh = conv1 output row within the pair-window)
    W1 = np.zeros((96, 896), f32)
    w1s = w1[:, 0, :, :] * s1[:, None, None]                           # [16,3,3]
    for dh in range(4):
        for wo in range(14):
            nb = (dh * 14 + wo) * 16
            for i in range(3):
                for j in range(3):
                    W1[(dh + i) * 16 + (wo + j), nb:nb + 16] = w1s[:, i, j]
    b1row = np.tile(bvec1, 4 * 14)[None, :]                            # [1, 896]

    # W2 [896, 192]: conv2 (stride 2, kernel 4) with the im2col folded in,
    # BN2 scale folded.  Output lane n = w2_out*32 + c2.
    W2 = np.zeros((896, 192), f32)
    w2s = w2 * s2[:, None, None, None]                                 # [32,16,4,4]
    for w2o in range(6):
        for c2 in range(32):
            n = w2o * 32 + c2
            for kh in range(4):
                for kw in range(4):
                    kb = (kh * 14 + 2 * w2o + kw) * 16
                    W2[kb:kb + 16, n] = w2s[c2, :, kh, kw]
    b2row = np.tile(bvec2, 6)[None, :]                                 # [1, 192]

    # W3 [768, 256]: linear1 with rows permuted from PyTorch's NCHW flatten
    # order (c2*24 + ho*6 + w2o) to the kernel's (ho, w2o, c2) order.
    ho_i, w_i, c_i = np.meshgrid(np.arange(4), np.arange(6), np.arange(32),
                                 indexing="ij")
    perm = (c_i * 24 + ho_i * 6 + w_i).reshape(-1)
    W3 = lw1.T[:, :][perm.argsort().argsort() * 0 + 0] if False else lw1[:, perm].T
    b3row = np.asarray(p["lb1"], f32)[None, :]                         # [1, 256]

    # W4 [256, 128]: head, output dim padded 7 -> 128 for a lane-dense store.
    W4 = np.zeros((256, 128), f32)
    W4[:, :7] = hw.T
    b4row = np.zeros((1, 128), f32)
    b4row[0, :7] = np.asarray(p["hb"], f32)

    jw = lambda a: jnp.asarray(a, dtype=weight_dtype)
    jb = lambda a: jnp.asarray(a, dtype=jnp.float32)
    return {"W1": jw(W1), "b1": jb(b1row), "W2": jw(W2), "b2": jb(b2row),
            "W3": jw(W3), "b3": jb(b3row), "W4": jw(W4), "b4": jb(b4row)}


def dqn_forward(x, prep):
    B = x.shape[0]
    assert tuple(x.shape[1:]) == (1, 12, 16), x.shape
    if x.dtype != jnp.float32:
        x = x.astype(jnp.float32)
    x2 = x.reshape(B, 12, 16)
    # Tiny (4B x 96) overlapping-window gather of the input: row (ho, b) holds
    # the 6 input rows feeding conv2's output row ho.  Fused into the same jit.
    xcol = jnp.stack([x2[:, 2 * ho:2 * ho + 6, :] for ho in range(4)], axis=0)
    xcol = xcol.reshape(4 * B, 96)
    out_pad = _build_call(B, prep)(
        xcol, prep["W1"], prep["b1"], prep["W2"], prep["b2"],
        prep["W3"], prep["b3"], prep["W4"], prep["b4"])
    return out_pad[:, :7]


# ---------------------------------------------------------------------------
# Pure-JAX reference (eval-mode BN) for a correctness check
# ---------------------------------------------------------------------------
def _reference_forward(x, p, eps=1e-5):
    def block(x, w, b, g, be, m, v, stride):
        y = jax.lax.conv_general_dilated(
            x, w, window_strides=(stride, stride), padding="VALID",
            dimension_numbers=("NCHW", "OIHW", "NCHW"))
        y = y + b[None, :, None, None]
        y = (y - m[None, :, None, None]) / jnp.sqrt(v[None, :, None, None] + eps)
        y = y * g[None, :, None, None] + be[None, :, None, None]
        return jnp.maximum(y, 0.0)

    y = block(x, p["w1"], p["b1"], p["g1"], p["be1"], p["m1"], p["v1"], 1)
    y = block(y, p["w2"], p["b2"], p["g2"], p["be2"], p["m2"], p["v2"], 2)
    y = y.reshape(y.shape[0], -1)
    y = jnp.maximum(y @ p["lw1"].T + p["lb1"], 0.0)
    return y @ p["hw"].T + p["hb"]


def init_params(key):
    ks = jax.random.split(key, 16)
    n = lambda k, shape, s=0.05: (s * jax.random.normal(k, shape)).astype(jnp.float32)
    u = lambda k, shape: jax.random.uniform(k, shape, jnp.float32, 0.5, 1.5)
    return {
        # conv1: Conv2d(1, 16, 3, stride=1) + BatchNorm2d(16)
        "w1": n(ks[0], (16, 1, 3, 3)), "b1": n(ks[1], (16,)),
        "g1": u(ks[2], (16,)), "be1": n(ks[3], (16,)),
        "m1": n(ks[4], (16,)), "v1": u(ks[5], (16,)),
        # conv2: Conv2d(16, 32, 4, stride=2) + BatchNorm2d(32)
        "w2": n(ks[6], (32, 16, 4, 4)), "b2": n(ks[7], (32,)),
        "g2": u(ks[8], (32,)), "be2": n(ks[9], (32,)),
        "m2": n(ks[10], (32,)), "v2": u(ks[11], (32,)),
        # linear1: Linear(768, 256)   (PyTorch weight layout: (out, in))
        "lw1": n(ks[12], (256, 768)), "lb1": n(ks[13], (256,)),
        # head: Linear(256, 7)
        "hw": n(ks[14], (7, 256)), "hb": n(ks[15], (7,)),
    }


if __name__ == "__main__":
    key = jax.random.PRNGKey(0)
    kx, kp = jax.random.split(key)
    # Input chosen so the flattened conv features equal 768 (32 * 4 * 6),
    # matching Linear(768, 256): NCHW x = [2, 1, 12, 16].
    x = jax.random.normal(kx, (2, 1, 12, 16), dtype=jnp.float32)
    params = init_params(kp)

    prep = prepare_params(params)            # one-time, hoisted out of forward
    fwd = jax.jit(dqn_forward)

    out = jax.block_until_ready(fwd(x, prep))
    assert out.shape == (2, 7), out.shape
    assert bool(jnp.all(jnp.isfinite(out)))

    ref = _reference_forward(x, params)
    err = float(jnp.max(jnp.abs(out - ref)))
    assert bool(jnp.allclose(out, ref, atol=5e-3, rtol=5e-3)), (
        "mismatch vs reference", err)

    print("KERNEL_OK")
</pallas_src>

<mosaic_0001>
module attributes {stable_mosaic.version = 11 : i64} {
  func.func @_dqn_kernel(%arg0: i32, %arg1: memref<8x96xf32, #tpu.memory_space<vmem>>, %arg2: memref<96x896xf32, #tpu.memory_space<vmem>>, %arg3: memref<1x896xf32, #tpu.memory_space<vmem>>, %arg4: memref<896x192xf32, #tpu.memory_space<vmem>>, %arg5: memref<1x192xf32, #tpu.memory_space<vmem>>, %arg6: memref<768x256xf32, #tpu.memory_space<vmem>>, %arg7: memref<1x256xf32, #tpu.memory_space<vmem>>, %arg8: memref<256x128xf32, #tpu.memory_space<vmem>>, %arg9: memref<1x128xf32, #tpu.memory_space<vmem>>, %arg10: memref<2x128xf32, #tpu.memory_space<vmem>>) attributes {dimension_semantics = [#tpu.dimension_semantics<arbitrary>], iteration_bounds = array<i64: 1>, scalar_prefetch = 0 : i64, scratch_operands = 0 : i64, tpu.core_type = #tpu.core_type<tc>, window_params = [{pipeline_mode = #tpu.pipeline_mode<synchronous>, transform_indices = @transform_0, window_bounds = array<i64: 8, 96>}, {pipeline_mode = #tpu.pipeline_mode<synchronous>, transform_indices = @transform_1, window_bounds = array<i64: 96, 896>}, {pipeline_mode = #tpu.pipeline_mode<synchronous>, transform_indices = @transform_2, window_bounds = array<i64: 1, 896>}, {pipeline_mode = #tpu.pipeline_mode<synchronous>, transform_indices = @transform_3, window_bounds = array<i64: 896, 192>}, {pipeline_mode = #tpu.pipeline_mode<synchronous>, transform_indices = @transform_4, window_bounds = array<i64: 1, 192>}, {pipeline_mode = #tpu.pipeline_mode<synchronous>, transform_indices = @transform_5, window_bounds = array<i64: 768, 256>}, {pipeline_mode = #tpu.pipeline_mode<synchronous>, transform_indices = @transform_6, window_bounds = array<i64: 1, 256>}, {pipeline_mode = #tpu.pipeline_mode<synchronous>, transform_indices = @transform_7, window_bounds = array<i64: 256, 128>}, {pipeline_mode = #tpu.pipeline_mode<synchronous>, transform_indices = @transform_8, window_bounds = array<i64: 1, 128>}, {pipeline_mode = #tpu.pipeline_mode<synchronous>, transform_indices = @transform_9, window_bounds = array<i64: 2, 128>}]} {
    %c0 = arith.constant 0 : index
    %c0_0 = arith.constant 0 : index
    %0 = vector.load %arg1[%c0, %c0_0] : memref<8x96xf32, #tpu.memory_space<vmem>>, vector<8x96xf32>
    %c0_1 = arith.constant 0 : index
    %c0_2 = arith.constant 0 : index
    %1 = vector.load %arg2[%c0_1, %c0_2] : memref<96x896xf32, #tpu.memory_space<vmem>>, vector<96x896xf32>
    %cst = arith.constant dense<0.000000e+00> : vector<8x896xf32>
    %2 = tpu.matmul %0, %1, %cst {dimension_numbers = #tpu.dot_dimension_numbers<[1], [0], [0], [1], [0, 0, 1, 1], [], []>} : vector<8x96xf32>, vector<96x896xf32>, vector<8x896xf32> -> vector<8x896xf32>
    %c0_3 = arith.constant 0 : index
    %c0_4 = arith.constant 0 : index
    %3 = vector.load %arg3[%c0_3, %c0_4] : memref<1x896xf32, #tpu.memory_space<vmem>>, vector<1x896xf32>
    %4 = vector.broadcast %3 : vector<1x896xf32> to vector<8x896xf32>
    %5 = arith.addf %2, %4 : vector<8x896xf32>
    %cst_5 = arith.constant 0.000000e+00 : f32
    %6 = vector.broadcast %cst_5 : f32 to vector<8x896xf32>
    %7 = arith.maximumf %5, %6 : vector<8x896xf32>
    %c0_6 = arith.constant 0 : index
    %c0_7 = arith.constant 0 : index
    %8 = vector.load %arg4[%c0_6, %c0_7] : memref<896x192xf32, #tpu.memory_space<vmem>>, vector<896x192xf32>
    %cst_8 = arith.constant dense<0.000000e+00> : vector<8x192xf32>
    %9 = tpu.matmul %7, %8, %cst_8 {dimension_numbers = #tpu.dot_dimension_numbers<[1], [0], [0], [1], [0, 0, 1, 1], [], []>} : vector<8x896xf32>, vector<896x192xf32>, vector<8x192xf32> -> vector<8x192xf32>
    %c0_9 = arith.constant 0 : index
    %c0_10 = arith.constant 0 : index
    %10 = vector.load %arg5[%c0_9, %c0_10] : memref<1x192xf32, #tpu.memory_space<vmem>>, vector<1x192xf32>
    %11 = vector.broadcast %10 : vector<1x192xf32> to vector<8x192xf32>
    %12 = arith.addf %9, %11 : vector<8x192xf32>
    %cst_11 = arith.constant 0.000000e+00 : f32
    %13 = vector.broadcast %cst_11 : f32 to vector<8x192xf32>
    %14 = arith.maximumf %12, %13 : vector<8x192xf32>
    %cst_12 = arith.constant 0.000000e+00 : f32
    %15 = vector.broadcast %cst_12 : f32 to vector<2x256xf32>
    %16 = vector.extract_strided_slice %14 {offsets = [0, 0], sizes = [2, 192], strides = [1, 1]} : vector<8x192xf32> to vector<2x192xf32>
    %c0_13 = arith.constant 0 : index
    %c0_14 = arith.constant 0 : index
    %17 = vector.load %arg6[%c0_13, %c0_14] : memref<768x256xf32, #tpu.memory_space<vmem>>, vector<192x256xf32>
    %cst_15 = arith.constant dense<0.000000e+00> : vector<2x256xf32>
    %18 = tpu.matmul %16, %17, %cst_15 {dimension_numbers = #tpu.dot_dimension_numbers<[1], [0], [0], [1], [0, 0, 1, 1], [], []>} : vector<2x192xf32>, vector<192x256xf32>, vector<2x256xf32> -> vector<2x256xf32>
    %19 = arith.addf %15, %18 : vector<2x256xf32>
    %20 = vector.extract_strided_slice %14 {offsets = [2, 0], sizes = [2, 192], strides = [1, 1]} : vector<8x192xf32> to vector<2x192xf32>
    %c192 = arith.constant 192 : index
    %c0_16 = arith.constant 0 : index
    %21 = vector.load %arg6[%c192, %c0_16] : memref<768x256xf32, #tpu.memory_space<vmem>>, vector<192x256xf32>
    %cst_17 = arith.constant dense<0.000000e+00> : vector<2x256xf32>
    %22 = tpu.matmul %20, %21, %cst_17 {dimension_numbers = #tpu.dot_dimension_numbers<[1], [0], [0], [1], [0, 0, 1, 1], [], []>} : vector<2x192xf32>, vector<192x256xf32>, vector<2x256xf32> -> vector<2x256xf32>
    %23 = arith.addf %19, %22 : vector<2x256xf32>
    %24 = vector.extract_strided_slice %14 {offsets = [4, 0], sizes = [2, 192], strides = [1, 1]} : vector<8x192xf32> to vector<2x192xf32>
    %c384 = arith.constant 384 : index
    %c0_18 = arith.constant 0 : index
    %25 = vector.load %arg6[%c384, %c0_18] : memref<768x256xf32, #tpu.memory_space<vmem>>, vector<192x256xf32>
    %cst_19 = arith.constant dense<0.000000e+00> : vector<2x256xf32>
    %26 = tpu.matmul %24, %25, %cst_19 {dimension_numbers = #tpu.dot_dimension_numbers<[1], [0], [0], [1], [0, 0, 1, 1], [], []>} : vector<2x192xf32>, vector<192x256xf32>, vector<2x256xf32> -> vector<2x256xf32>
    %27 = arith.addf %23, %26 : vector<2x256xf32>
    %28 = vector.extract_strided_slice %14 {offsets = [6, 0], sizes = [2, 192], strides = [1, 1]} : vector<8x192xf32> to vector<2x192xf32>
    %c576 = arith.constant 576 : index
    %c0_20 = arith.constant 0 : index
    %29 = vector.load %arg6[%c576, %c0_20] : memref<768x256xf32, #tpu.memory_space<vmem>>, vector<192x256xf32>
    %cst_21 = arith.constant dense<0.000000e+00> : vector<2x256xf32>
    %30 = tpu.matmul %28, %29, %cst_21 {dimension_numbers = #tpu.dot_dimension_numbers<[1], [0], [0], [1], [0, 0, 1, 1], [], []>} : vector<2x192xf32>, vector<192x256xf32>, vector<2x256xf32> -> vector<2x256xf32>
    %31 = arith.addf %27, %30 : vector<2x256xf32>
    %c0_22 = arith.constant 0 : index
    %c0_23 = arith.constant 0 : index
    %32 = vector.load %arg7[%c0_22, %c0_23] : memref<1x256xf32, #tpu.memory_space<vmem>>, vector<1x256xf32>
    %33 = vector.broadcast %32 : vector<1x256xf32> to vector<2x256xf32>
    %34 = arith.addf %31, %33 : vector<2x256xf32>
    %cst_24 = arith.constant 0.000000e+00 : f32
    %35 = vector.broadcast %cst_24 : f32 to vector<2x256xf32>
    %36 = arith.maximumf %34, %35 : vector<2x256xf32>
    %c0_25 = arith.constant 0 : index
    %c0_26 = arith.constant 0 : index
    %37 = vector.load %arg8[%c0_25, %c0_26] : memref<256x128xf32, #tpu.memory_space<vmem>>, vector<256x128xf32>
    %cst_27 = arith.constant dense<0.000000e+00> : vector<2x128xf32>
    %38 = tpu.matmul %36, %37, %cst_27 {dimension_numbers = #tpu.dot_dimension_numbers<[1], [0], [0], [1], [0, 0, 1, 1], [], []>} : vector<2x256xf32>, vector<256x128xf32>, vector<2x128xf32> -> vector<2x128xf32>
    %c0_28 = arith.constant 0 : index
    %c0_29 = arith.constant 0 : index
    %39 = vector.load %arg9[%c0_28, %c0_29] : memref<1x128xf32, #tpu.memory_space<vmem>>, vector<1x128xf32>
    %40 = vector.broadcast %39 : vector<1x128xf32> to vector<2x128xf32>
    %41 = arith.addf %38, %40 : vector<2x128xf32>
    %c0_30 = arith.constant 0 : index
    %c0_31 = arith.constant 0 : index
    %42 = vector.load %arg10[%c0_30, %c0_31] : memref<2x128xf32, #tpu.memory_space<vmem>>, vector<2x128xf32>
    tpu.vector_store %arg10[%c0_30, %c0_31], %41 {strides = array<i32>} : memref<2x128xf32, #tpu.memory_space<vmem>>, vector<2x128xf32>,
    return
  }
  func.func @transform_0(%arg0: i32) -> (i32, i32) {
    %c0_i32 = arith.constant 0 : i32
    %c0_i32_0 = arith.constant 0 : i32
    %c0_i32_1 = arith.constant 0 : i32
    return %c0_i32, %c0_i32_0 : i32, i32
  }
  func.func @transform_1(%arg0: i32) -> (i32, i32) {
    %c0_i32 = arith.constant 0 : i32
    %c0_i32_0 = arith.constant 0 : i32
    %c0_i32_1 = arith.constant 0 : i32
    return %c0_i32, %c0_i32_0 : i32, i32
  }
  func.func @transform_2(%arg0: i32) -> (i32, i32) {
    %c0_i32 = arith.constant 0 : i32
    %c0_i32_0 = arith.constant 0 : i32
    %c0_i32_1 = arith.constant 0 : i32
    return %c0_i32, %c0_i32_0 : i32, i32
  }
  func.func @transform_3(%arg0: i32) -> (i32, i32) {
    %c0_i32 = arith.constant 0 : i32
    %c0_i32_0 = arith.constant 0 : i32
    %c0_i32_1 = arith.constant 0 : i32
    return %c0_i32, %c0_i32_0 : i32, i32
  }
  func.func @transform_4(%arg0: i32) -> (i32, i32) {
    %c0_i32 = arith.constant 0 : i32
    %c0_i32_0 = arith.constant 0 : i32
    %c0_i32_1 = arith.constant 0 : i32
    return %c0_i32, %c0_i32_0 : i32, i32
  }
  func.func @transform_5(%arg0: i32) -> (i32, i32) {
    %c0_i32 = arith.constant 0 : i32
    %c0_i32_0 = arith.constant 0 : i32
    %c0_i32_1 = arith.constant 0 : i32
    return %c0_i32, %c0_i32_0 : i32, i32
  }
  func.func @transform_6(%arg0: i32) -> (i32, i32) {
    %c0_i32 = arith.constant 0 : i32
    %c0_i32_0 = arith.constant 0 : i32
    %c0_i32_1 = arith.constant 0 : i32
    return %c0_i32, %c0_i32_0 : i32, i32
  }
  func.func @transform_7(%arg0: i32) -> (i32, i32) {
    %c0_i32 = arith.constant 0 : i32
    %c0_i32_0 = arith.constant 0 : i32
    %c0_i32_1 = arith.constant 0 : i32
    return %c0_i32, %c0_i32_0 : i32, i32
  }
  func.func @transform_8(%arg0: i32) -> (i32, i32) {
    %c0_i32 = arith.constant 0 : i32
    %c0_i32_0 = arith.constant 0 : i32
    %c0_i32_1 = arith.constant 0 : i32
    return %c0_i32, %c0_i32_0 : i32, i32
  }
  func.func @transform_9(%arg0: i32) -> (i32, i32) {
    %c0_i32 = arith.constant 0 : i32
    %c0_i32_0 = arith.constant 0 : i32
    %c0_i32_1 = arith.constant 0 : i32
    return %c0_i32, %c0_i32_0 : i32, i32
  }
}

</mosaic_0001>

<bundles_post_ra>
// kernel: dqn_forward.1
= control target key start
LH: loop header
LB: loop body
LE: loop exit
PB: predicated region body
PF: predicated region fallthrough
CT: control target
= control target key end

     0   :  { %v2275_v7 = vmov 0.0   ;;  %vm155_vm0 = vcmask 785408   ;;  %vm2277_vm1 = vmmov 0   ;;  %s4029_s0 = inlined_call_operand.vmem [shape: f32[8,96], index: 0, kind: input, shape index: {}]   ;;  %s4030_s1 = inlined_call_operand.vmem [shape: f32[96,896], index: 1, kind: input, shape index: {}]   ;;  %s4031_s2 = inlined_call_operand.vmem [shape: f32[1,896], index: 2, kind: input, shape index: {}]   ;;  %s4032_s3 = inlined_call_operand.vmem [shape: f32[896,192], index: 3, kind: input, shape index: {}]   ;;  %s4033_s4 = inlined_call_operand.vmem [shape: f32[1,192], index: 4, kind: input, shape index: {}]   ;;  %s4034_s5 = inlined_call_operand.vmem [shape: f32[768,256], index: 5, kind: input, shape index: {}]   ;;  %s4035_s6 = inlined_call_operand.vmem [shape: f32[1,256], index: 6, kind: input, shape index: {}]   ;;  %s4036_s7 = inlined_call_operand.vmem [shape: f32[256,128], index: 7, kind: input, shape index: {}]   ;;  %s4037_s8 = inlined_call_operand.vmem [shape: f32[1,128], index: 8, kind: input, shape index: {}]   ;;  %s4038_s9 = inlined_call_operand.hbm [shape: f32[2,128], index: 9, kind: output, shape index: {}]  }
   0x1   :  { %v35_v0 = vld [vmem:[%s4030_s1 + $0x8] sm:$0xff]  ;;  %v42_v1 = vld [vmem:[%s4030_s1 + $0x40] sm:$0xff]  ;;  %v41_v4 = vld [vmem:[%s4030_s1 + $0x38] sm:$0xff]  ;;  %223 = vmatprep.mubr.f32.mxu0 %v2275_v7  ;;  %294 = vmatprep.mubr.f32.mxu1 %v2275_v7 }
   0x2   :  { %v34_v2 = vld [vmem:[%s4030_s1] sm:$0xff]  ;;  %v1695_v3 = vpack.c.bf16 %v42_v1, %v35_v0  ;;  %v49_v5 = vld [vmem:[%s4030_s1 + $0x78] sm:$0xff]  ;;  %v56_v6 = vld [vmem:[%s4030_s1 + $0xb0] sm:$0xff] }
   0x3   :  { %v1697_v8 = vpack.c.bf16 %v41_v4, %v34_v2  ;;  %v1699_v9 = vpack.c.bf16 %v56_v6, %v49_v5  ;;  %v48_v10 = vld [vmem:[%s4030_s1 + $0x70] sm:$0xff]  ;;  %v55_v11 = vld [vmem:[%s4030_s1 + $0xa8] sm:$0xff]  ;;  %v70_v13 = vld [vmem:[%s4030_s1 + $0x120] sm:$0xff] }
   0x4   :  { %v63_v12 = vld [vmem:[%s4030_s1 + $0xe8] sm:$0xff]  ;;  %1696 = vmatprep.subr.bf16.mxu0 %v1695_v3  ;;  %v1701_v14 = vpack.c.bf16 %v55_v11, %v48_v10  ;;  %v62_v16 = vld [vmem:[%s4030_s1 + $0xe0] sm:$0xff]  ;;  %v69_v17 = vld [vmem:[%s4030_s1 + $0x118] sm:$0xff] }
   0x5   :  { %1698 = vmatpush1.bf16.msra.mxu0 %v1697_v8  ;;  %v1703_v15 = vpack.c.bf16 %v70_v13, %v63_v12  ;;  %v77_v18 = vld [vmem:[%s4030_s1 + $0x158] sm:$0xff]  ;;  %v84_v19 = vld [vmem:[%s4030_s1 + $0x190] sm:$0xff]  ;;  %v83_v21 = vld [vmem:[%s4030_s1 + $0x188] sm:$0xff]  ;;  %v1705_v22 = vpack.c.bf16 %v69_v17, %v62_v16 }
   0x6   :  { %1700 = vmatprep.subr.bf16.mxu0 %v1699_v9  ;;  %v76_v20 = vld [vmem:[%s4030_s1 + $0x150] sm:$0xff]  ;;  %v91_v23 = vld [vmem:[%s4030_s1 + $0x1c8] sm:$0xff]  ;;  %v98_v24 = vld [vmem:[%s4030_s1 + $0x200] sm:$0xff]  ;;  %v1707_v27 = vpack.c.bf16 %v84_v19, %v77_v18 }
   0x7   :  { %v37_v25 = vld [vmem:[%s4030_s1 + $0x18] sm:$0xff]  ;;  %v44_v26 = vld [vmem:[%s4030_s1 + $0x50] sm:$0xff]  ;;  %v43_v30 = vld [vmem:[%s4030_s1 + $0x48] sm:$0xff]  ;;  %v1709_v39 = vpack.c.bf16 %v83_v21, %v76_v20  ;;  %v1711_v43 = vpack.c.bf16 %v98_v24, %v91_v23 }
   0x8   :  { %v1719_v28 = vpack.c.bf16 %v44_v26, %v37_v25  ;;  %v36_v29 = vld [vmem:[%s4030_s1 + $0x10] sm:$0xff]  ;;  %v51_v31 = vld [vmem:[%s4030_s1 + $0x88] sm:$0xff]  ;;  %v58_v33 = vld [vmem:[%s4030_s1 + $0xc0] sm:$0xff] }
   0x9   :  { %1702 = vmatpush1.bf16.msra.mxu0 %v1701_v14  ;;  %v1721_v32 = vpack.c.bf16 %v43_v30, %v36_v29  ;;  %v50_v34 = vld [vmem:[%s4030_s1 + $0x80] sm:$0xff]  ;;  %v57_v35 = vld [vmem:[%s4030_s1 + $0xb8] sm:$0xff]  ;;  %v1723_v36 = vpack.c.bf16 %v58_v33, %v51_v31  ;;  %v72_v38 = vld [vmem:[%s4030_s1 + $0x130] sm:$0xff] }
   0xa   :  { %1704 = vmatprep.subr.bf16.mxu0 %v1703_v15  ;;  %1720 = vmatprep.subr.bf16.mxu1 %v1719_v28  ;;  %v65_v37 = vld [vmem:[%s4030_s1 + $0xf8] sm:$0xff]  ;;  %v90_v40 = vld [vmem:[%s4030_s1 + $0x1c0] sm:$0xff]  ;;  %v1725_v42 = vpack.c.bf16 %v57_v35, %v50_v34  ;;  %v64_v46 = vld [vmem:[%s4030_s1 + $0xf0] sm:$0xff] }
   0xb   :  { %v97_v41 = vld [vmem:[%s4030_s1 + $0x1f8] sm:$0xff]  ;;  %1722 = vmatpush1.bf16.msra.mxu1 %v1721_v32  ;;  %v1727_v45 = vpack.c.bf16 %v72_v38, %v65_v37  ;;  %v71_v47 = vld [vmem:[%s4030_s1 + $0x128] sm:$0xff]  ;;  %v112_v48 = vld [vmem:[%s4030_s1 + $0x270] sm:$0xff]  ;;  %v2276_v37 = vmov 0.0|0.0  }
   0xc   :  { %v105_v44 = vld [vmem:[%s4030_s1 + $0x238] sm:$0xff]  ;;  %1724 = vmatprep.subr.bf16.mxu1 %v1723_v36  ;;  %v79_v49 = vld [vmem:[%s4030_s1 + $0x168] sm:$0xff]  ;;  %v86_v50 = vld [vmem:[%s4030_s1 + $0x1a0] sm:$0xff]  ;;  %v1713_v51 = vpack.c.bf16 %v97_v41, %v90_v40  ;;  %v1729_v54 = vpack.c.bf16 %v71_v47, %v64_v46 }
   0xd   :  { %1706 = vmatpush1.bf16.msra.mxu0 %v1705_v22  ;;  %v104_v52 = vld [vmem:[%s4030_s1 + $0x230] sm:$0xff]  ;;  %v111_v53 = vld [vmem:[%s4030_s1 + $0x268] sm:$0xff]  ;;  %v1715_v55 = vpack.c.bf16 %v112_v48, %v105_v44  ;;  %v1731_v56 = vpack.c.bf16 %v86_v50, %v79_v49  ;;  %v78_v57 = vld [vmem:[%s4030_s1 + $0x160] sm:$0xff] }
   0xe   :  { %1708 = vmatprep.subr.bf16.mxu0 %v1707_v27  ;;  %v85_v58 = vld [vmem:[%s4030_s1 + $0x198] sm:$0xff]  ;;  %v100_v60 = vld [vmem:[%s4030_s1 + $0x210] sm:$0xff]  ;;  %v39_v61 = vld [vmem:[%s4030_s1 + $0x28] sm:$0xff]  ;;  %v1717_v63 = vpack.c.bf16 %v111_v53, %v104_v52 }
   0xf   :  { %1726 = vmatpush1.bf16.msra.mxu1 %v1725_v42  ;;  %v93_v59 = vld [vmem:[%s4030_s1 + $0x1d8] sm:$0xff]  ;;  %v46_v62 = vld [vmem:[%s4030_s1 + $0x60] sm:$0xff]  ;;  %v1733_v0 = vpack.c.bf16 %v85_v58, %v78_v57  ;;  %v92_v1 = vld [vmem:[%s4030_s1 + $0x1d0] sm:$0xff] }
  0x10   :  { %1728 = vmatprep.subr.bf16.mxu1 %v1727_v45  ;;  %v99_v2 = vld [vmem:[%s4030_s1 + $0x208] sm:$0xff]  ;;  %v1735_v3 = vpack.c.bf16 %v100_v60, %v93_v59  ;;  %v1743_v5 = vpack.c.bf16 %v46_v62, %v39_v61  ;;  %v38_v6 = vld [vmem:[%s4030_s1 + $0x20] sm:$0xff]  ;;  %v45_v8 = vld [vmem:[%s4030_s1 + $0x58] sm:$0xff] }
  0x11   :  { %1710 = vmatpush1.bf16.msra.mxu0 %v1709_v39  ;;  %v107_v4 = vld [vmem:[%s4030_s1 + $0x248] sm:$0xff]  ;;  %v114_v9 = vld [vmem:[%s4030_s1 + $0x280] sm:$0xff]  ;;  %v53_v10 = vld [vmem:[%s4030_s1 + $0x98] sm:$0xff]  ;;  %v1737_v13 = vpack.c.bf16 %v99_v2, %v92_v1  ;;  %v1745_v15 = vpack.c.bf16 %v45_v8, %v38_v6 }
  0x12   :  { %1712 = vmatprep.subr.bf16.mxu0 %v1711_v43  ;;  %v60_v11 = vld [vmem:[%s4030_s1 + $0xd0] sm:$0xff]  ;;  %v2490_v12 = vld [vmem:[%s4029_s0] sm:$0xff]  ;;  %v1739_v16 = vpack.c.bf16 %v114_v9, %v107_v4  ;;  %v113_v17 = vld [vmem:[%s4030_s1 + $0x278] sm:$0xff] }
  0x13   :  { %1730 = vmatpush1.bf16.msra.mxu1 %v1729_v54  ;;  %v106_v14 = vld [vmem:[%s4030_s1 + $0x240] sm:$0xff]  ;;  %v1747_v18 = vpack.c.bf16 %v60_v11, %v53_v10  ;;  %v52_v19 = vld [vmem:[%s4030_s1 + $0x90] sm:$0xff]  ;;  %v59_v20 = vld [vmem:[%s4030_s1 + $0xc8] sm:$0xff] }
  0x14   :  { %1732 = vmatprep.subr.bf16.mxu1 %v1731_v56  ;;  %v67_v21 = vld [vmem:[%s4030_s1 + $0x108] sm:$0xff]  ;;  %v74_v22 = vld [vmem:[%s4030_s1 + $0x140] sm:$0xff]  ;;  %v1741_v23 = vpack.c.bf16 %v113_v17, %v106_v14  ;;  %v1749_v24 = vpack.c.bf16 %v59_v20, %v52_v19  ;;  %v73_v27 = vld [vmem:[%s4030_s1 + $0x138] sm:$0xff] }
  0x15   :  { %1714 = vmatpush1.bf16.msra.mxu0 %v1713_v51  ;;  %v66_v25 = vld [vmem:[%s4030_s1 + $0x100] sm:$0xff]  ;;  %v1751_v26 = vpack.c.bf16 %v74_v22, %v67_v21  ;;  %v40_v28 = vld [vmem:[%s4030_s1 + $0x30] sm:$0xff]  ;;  %v47_v29 = vld [vmem:[%s4030_s1 + $0x68] sm:$0xff] }
  0x16   :  { %1716 = vmatprep.subr.bf16.mxu0 %v1715_v55  ;;  %v81_v30 = vld [vmem:[%s4030_s1 + $0x178] sm:$0xff]  ;;  %v88_v31 = vld [vmem:[%s4030_s1 + $0x1b0] sm:$0xff]  ;;  %v1753_v32 = vpack.c.bf16 %v73_v27, %v66_v25  ;;  %v1768_v34 = vpack.c.bf16 %v47_v29, %v40_v28  ;;  %v87_v36 = vld [vmem:[%s4030_s1 + $0x1a8] sm:$0xff] }
  0x17   :  { %1734 = vmatpush1.bf16.msra.mxu1 %v1733_v0  ;;  %v80_v33 = vld [vmem:[%s4030_s1 + $0x170] sm:$0xff]  ;;  %v1755_v35 = vpack.c.bf16 %v88_v31, %v81_v30  ;;  %v54_v38 = vld [vmem:[%s4030_s1 + $0xa0] sm:$0xff]  ;;  %v61_v39 = vld [vmem:[%s4030_s1 + $0xd8] sm:$0xff] }
  0x18   :  { %1736 = vmatprep.subr.bf16.mxu1 %v1735_v3  ;;  %v95_v40 = vld [vmem:[%s4030_s1 + $0x1e8] sm:$0xff]  ;;  %v102_v41 = vld [vmem:[%s4030_s1 + $0x220] sm:$0xff]  ;;  %v1757_v42 = vpack.c.bf16 %v87_v36, %v80_v33  ;;  %v1771_v44 = vpack.c.bf16 %v61_v39, %v54_v38  ;;  %v101_v46 = vld [vmem:[%s4030_s1 + $0x218] sm:$0xff] }
  0x19   :  { %1718 = vmatpush1.bf16.msra.mxu0 %v1717_v63  ;;  %v94_v43 = vld [vmem:[%s4030_s1 + $0x1e0] sm:$0xff]  ;;  %v1759_v45 = vpack.c.bf16 %v102_v41, %v95_v40  ;;  %v68_v47 = vld [vmem:[%s4030_s1 + $0x110] sm:$0xff]  ;;  %v75_v48 = vld [vmem:[%s4030_s1 + $0x148] sm:$0xff] }
  0x1a   :  { %1744 = vmatprep.subr.bf16.mxu0 %v1743_v5  ;;  %v109_v49 = vld [vmem:[%s4030_s1 + $0x258] sm:$0xff]  ;;  %v116_v50 = vld [vmem:[%s4030_s1 + $0x290] sm:$0xff]  ;;  %v1761_v51 = vpack.c.bf16 %v101_v46, %v94_v43  ;;  %v1774_v53 = vpack.c.bf16 %v75_v48, %v68_v47  ;;  %v115_v55 = vld [vmem:[%s4030_s1 + $0x288] sm:$0xff] }
  0x1b   :  { %1738 = vmatpush1.bf16.msra.mxu1 %v1737_v13  ;;  %v108_v52 = vld [vmem:[%s4030_s1 + $0x250] sm:$0xff]  ;;  %v1763_v54 = vpack.c.bf16 %v116_v50, %v109_v49  ;;  %v82_v56 = vld [vmem:[%s4030_s1 + $0x180] sm:$0xff]  ;;  %v89_v57 = vld [vmem:[%s4030_s1 + $0x1b8] sm:$0xff] }
  0x1c   :  { %1611 = vmatmul.mubr.msk.f32.vlgmr.msra.gmra.mrb[0].mxu0 %vm155_vm0, %v2490_v12  ;;  %1740 = vmatprep.subr.bf16.mxu1 %v1739_v16  ;;  %v450_v58 = vld [vmem:[%s4032_s3 + $0x8] sm:$0xff]  ;;  %v452_v59 = vld [vmem:[%s4032_s3 + $0x18] sm:$0xff]  ;;  %v1765_v60 = vpack.c.bf16 %v115_v55, %v108_v52  ;;  %v1777_v61 = vpack.c.bf16 %v89_v57, %v82_v56  ;;  %v96_v62 = vld [vmem:[%s4030_s1 + $0x1f0] sm:$0xff] }
  0x1d   :  { %1746 = vmatpush1.bf16.msra.mxu0 %v1745_v15  ;;  %365 = vmatprep.mubr.f32.mxu0 %v2275_v7  ;;  %v103_v63 = vld [vmem:[%s4030_s1 + $0x228] sm:$0xff]  ;;  %v1785_v0 = vpack.c.bf16 %v452_v59, %v450_v58  ;;  %v449_v1 = vld [vmem:[%s4032_s3] sm:$0xff]  ;;  %v451_v2 = vld [vmem:[%s4032_s3 + $0x10] sm:$0xff] }
  0x1e   :  { %1748 = vmatprep.subr.bf16.mxu0 %v1747_v18  ;;  %v454_v3 = vld [vmem:[%s4032_s3 + $0x28] sm:$0xff]  ;;  %v456_v4 = vld [vmem:[%s4032_s3 + $0x38] sm:$0xff]  ;;  %v1780_v5 = vpack.c.bf16 %v103_v63, %v96_v62  ;;  %v1787_v6 = vpack.c.bf16 %v451_v2, %v449_v1  ;;  %v110_v8 = vld [vmem:[%s4030_s1 + $0x260] sm:$0xff] }
  0x1f   :  { %1742 = vmatpush1.bf16.msra.mxu1 %v1741_v23 }
  0x20   :  { %1767 = vmatprep.subr.bf16.mxu1 %v2276_v37 }
  0x21   :  { %1750 = vmatpush1.bf16.msra.mxu0 %v1749_v24 }
  0x22   :  { %1752 = vmatprep.subr.bf16.mxu0 %v1751_v26  ;;  %1612 = vmatmul.mubr.msk.f32.vlgmr.msra.gmra.mrb[0].mxu1 %vm155_vm0, %v2490_v12 }
  0x23   :  { %1769 = vmatpush3.bf16.msra.mxu1 %v1768_v34  ;;  %1692 = vmatprep.mubr.msk.f32.mxu1 %vm2277_vm1, %v2275_v7 }
  0x24   :  { %1770 = vmatprep.subr.bf16.mxu1 %v2276_v37 }
  0x25   :  { %1754 = vmatpush1.bf16.msra.mxu0 %v1753_v32 }
  0x26   :  { %1756 = vmatprep.subr.bf16.mxu0 %v1755_v35 }
  0x27   :  { %1772 = vmatpush3.bf16.msra.mxu1 %v1771_v44 }
  0x28   :  { %1773 = vmatprep.subr.bf16.mxu1 %v2276_v37 }
  0x29   :  { %1758 = vmatpush1.bf16.msra.mxu0 %v1757_v42 }
  0x2a   :  { %1760 = vmatprep.subr.bf16.mxu0 %v1759_v45 }
  0x2b   :  { %1775 = vmatpush3.bf16.msra.mxu1 %v1774_v53 }
  0x2c   :  { %1776 = vmatprep.subr.bf16.mxu1 %v2276_v37 }
  0x2d   :  { %1762 = vmatpush1.bf16.msra.mxu0 %v1761_v51 }
  0x2e   :  { %1764 = vmatprep.subr.bf16.mxu0 %v1763_v54 }
  0x2f   :  { %1778 = vmatpush3.bf16.msra.mxu1 %v1777_v61 }
  0x31   :  { %1766 = vmatpush1.bf16.msra.mxu0 %v1765_v60 }
  0x32   :  { %14 = vsyncpa [#allocation3], 0  ;;  %1779 = vmatprep.subr.bf16.mxu1 %v2276_v37  ;;  %1786 = vmatprep.subr.bf16.mxu0 %v1785_v0  ;;  %v117_v9 = vld [vmem:[%s4030_s1 + $0x298] sm:$0xff]  ;;  %v1789_v10 = vpack.c.bf16 %v456_v4, %v454_v3  ;;  %v453_v11 = vld [vmem:[%s4032_s3 + $0x20] sm:$0xff]  ;;  %vm1072_vm2 = vcmask 523264  }
  0x33   :  { %v455_v13 = vld [vmem:[%s4032_s3 + $0x30] sm:$0xff]  ;;  %v458_v14 = vld [vmem:[%s4032_s3 + $0x48] sm:$0xff]  ;;  %v460_v15 = vld [vmem:[%s4032_s3 + $0x58] sm:$0xff]  ;;  %1781 = vmatpush3.bf16.msra.mxu1 %v1780_v5  ;;  %v1783_v16 = vpack.c.bf16 %v117_v9, %v110_v8 }
  0x34   :  { %1613 = vmatmul.mubr.msk.f32.vlgmr.msra.gmra.mrb[2].mxu0 %vm155_vm0, %v2490_v12  ;;  %v1791_v17 = vpack.c.bf16 %v455_v13, %v453_v11  ;;  %1782 = vmatprep.subr.bf16.mxu1 %v2276_v37  ;;  %v1793_v18 = vpack.c.bf16 %v460_v15, %v458_v14  ;;  %v457_v19 = vld [vmem:[%s4032_s3 + $0x40] sm:$0xff]  ;;  %v459_v20 = vld [vmem:[%s4032_s3 + $0x50] sm:$0xff]  ;;  %v462_v21 = vld [vmem:[%s4032_s3 + $0x68] sm:$0xff] }
  0x35   :  { %1788 = vmatpush1.bf16.msra.mxu0 %v1787_v6  ;;  %v464_v22 = vld [vmem:[%s4032_s3 + $0x78] sm:$0xff]  ;;  %v1795_v23 = vpack.c.bf16 %v459_v20, %v457_v19  ;;  %v461_v25 = vld [vmem:[%s4032_s3 + $0x60] sm:$0xff]  ;;  %v463_v26 = vld [vmem:[%s4032_s3 + $0x70] sm:$0xff] }
  0x36   :  { %1790 = vmatprep.subr.bf16.mxu0 %v1789_v10  ;;  %v1797_v24 = vpack.c.bf16 %v464_v22, %v462_v21  ;;  %v466_v27 = vld [vmem:[%s4032_s3 + $0x88] sm:$0xff]  ;;  %v468_v28 = vld [vmem:[%s4032_s3 + $0x98] sm:$0xff]  ;;  %v1799_v29 = vpack.c.bf16 %v463_v26, %v461_v25  ;;  %v465_v31 = vld [vmem:[%s4032_s3 + $0x80] sm:$0xff] }
  0x37   :  { %1784 = vmatpush3.bf16.msra.mxu1 %v1783_v16  ;;  %v1801_v30 = vpack.c.bf16 %v468_v28, %v466_v27  ;;  %v467_v32 = vld [vmem:[%s4032_s3 + $0x90] sm:$0xff]  ;;  %v470_v33 = vld [vmem:[%s4032_s3 + $0xa8] sm:$0xff]  ;;  %v469_v36 = vld [vmem:[%s4032_s3 + $0xa0] sm:$0xff] }
  0x38   :  { %v1803_v34 = vpack.c.bf16 %v467_v32, %v465_v31  ;;  %v471_v37 = vld [vmem:[%s4032_s3 + $0xb0] sm:$0xff]  ;;  %v474_v38 = vld [vmem:[%s4032_s3 + $0xc8] sm:$0xff]  ;;  %v476_v39 = vld [vmem:[%s4032_s3 + $0xd8] sm:$0xff] }
  0x39   :  { %1792 = vmatpush1.bf16.msra.mxu0 %v1791_v17  ;;  %v1807_v40 = vpack.c.bf16 %v471_v37, %v469_v36  ;;  %v1809_v41 = vpack.c.bf16 %v476_v39, %v474_v38  ;;  %v473_v42 = vld [vmem:[%s4032_s3 + $0xc0] sm:$0xff]  ;;  %v475_v43 = vld [vmem:[%s4032_s3 + $0xd0] sm:$0xff]  ;;  %v478_v44 = vld [vmem:[%s4032_s3 + $0xe8] sm:$0xff]  ;;  %v120_v39 = vlaneseq }
  0x3a   :  { %1794 = vmatprep.subr.bf16.mxu0 %v1793_v18  ;;  %1693 = vmatmul.mubr.msk.f32.vlgmr.msra.gmra.mrb[2].mxu1 %vm155_vm0, %v2490_v12  ;;  %v472_v12 = vld [vmem:[%s4032_s3 + $0xb8] sm:$0xff]  ;;  %v1811_v46 = vpack.c.bf16 %v475_v43, %v473_v42  ;;  %v477_v48 = vld [vmem:[%s4032_s3 + $0xe0] sm:$0xff]  ;;  %v479_v49 = vld [vmem:[%s4032_s3 + $0xf0] sm:$0xff] }
  0x3b   :  { %v1805_v35 = vpack.c.bf16 %v472_v12, %v470_v33  ;;  %v480_v45 = vld [vmem:[%s4032_s3 + $0xf8] sm:$0xff]  ;;  %v482_v50 = vld [vmem:[%s4032_s3 + $0x108] sm:$0xff]  ;;  %v1815_v52 = vpack.c.bf16 %v479_v49, %v477_v48  ;;  %v481_v54 = vld [vmem:[%s4032_s3 + $0x100] sm:$0xff] }
  0x3c   :  { %v1813_v47 = vpack.c.bf16 %v480_v45, %v478_v44  ;;  %v484_v51 = vld [vmem:[%s4032_s3 + $0x118] sm:$0xff]  ;;  %v483_v55 = vld [vmem:[%s4032_s3 + $0x110] sm:$0xff]  ;;  %v486_v56 = vld [vmem:[%s4032_s3 + $0x128] sm:$0xff] }
  0x3d   :  { %1796 = vmatpush1.bf16.msra.mxu0 %v1795_v23  ;;  %v1817_v53 = vpack.c.bf16 %v484_v51, %v482_v50  ;;  %v488_v57 = vld [vmem:[%s4032_s3 + $0x138] sm:$0xff]  ;;  %v1819_v58 = vpack.c.bf16 %v483_v55, %v481_v54  ;;  %v485_v60 = vld [vmem:[%s4032_s3 + $0x120] sm:$0xff]  ;;  %v487_v61 = vld [vmem:[%s4032_s3 + $0x130] sm:$0xff] }
  0x3e   :  { %1798 = vmatprep.subr.bf16.mxu0 %v1797_v24  ;;  %v1821_v59 = vpack.c.bf16 %v488_v57, %v486_v56  ;;  %v490_v62 = vld [vmem:[%s4032_s3 + $0x148] sm:$0xff]  ;;  %v492_v63 = vld [vmem:[%s4032_s3 + $0x158] sm:$0xff]  ;;  %v1823_v0 = vpack.c.bf16 %v487_v61, %v485_v60  ;;  %v489_v2 = vld [vmem:[%s4032_s3 + $0x140] sm:$0xff] }
  0x3f   :  { %v1825_v1 = vpack.c.bf16 %v492_v63, %v490_v62  ;;  %v491_v3 = vld [vmem:[%s4032_s3 + $0x150] sm:$0xff]  ;;  %v494_v4 = vld [vmem:[%s4032_s3 + $0x168] sm:$0xff]  ;;  %v496_v5 = vld [vmem:[%s4032_s3 + $0x178] sm:$0xff] }
  0x40   :  { %v1827_v6 = vpack.c.bf16 %v491_v3, %v489_v2  ;;  %v1829_v8 = vpack.c.bf16 %v496_v5, %v494_v4  ;;  %v493_v9 = vld [vmem:[%s4032_s3 + $0x160] sm:$0xff]  ;;  %v495_v10 = vld [vmem:[%s4032_s3 + $0x170] sm:$0xff]  ;;  %v498_v11 = vld [vmem:[%s4032_s3 + $0x188] sm:$0xff] }
  0x41   :  { %1800 = vmatpush1.bf16.msra.mxu0 %v1799_v29  ;;  %v500_v13 = vld [vmem:[%s4032_s3 + $0x198] sm:$0xff]  ;;  %v1831_v14 = vpack.c.bf16 %v495_v10, %v493_v9  ;;  %v497_v16 = vld [vmem:[%s4032_s3 + $0x180] sm:$0xff]  ;;  %v499_v17 = vld [vmem:[%s4032_s3 + $0x190] sm:$0xff] }
  0x42   :  { %1802 = vmatprep.subr.bf16.mxu0 %v1801_v30  ;;  %v1833_v15 = vpack.c.bf16 %v500_v13, %v498_v11  ;;  %v502_v18 = vld [vmem:[%s4032_s3 + $0x1a8] sm:$0xff]  ;;  %v504_v19 = vld [vmem:[%s4032_s3 + $0x1b8] sm:$0xff]  ;;  %v1835_v20 = vpack.c.bf16 %v499_v17, %v497_v16  ;;  %v501_v22 = vld [vmem:[%s4032_s3 + $0x1a0] sm:$0xff] }
  0x43   :  { %v1837_v21 = vpack.c.bf16 %v504_v19, %v502_v18  ;;  %v503_v23 = vld [vmem:[%s4032_s3 + $0x1b0] sm:$0xff]  ;;  %v506_v24 = vld [vmem:[%s4032_s3 + $0x1c8] sm:$0xff]  ;;  %v508_v25 = vld [vmem:[%s4032_s3 + $0x1d8] sm:$0xff] }
  0x44   :  { %v1839_v26 = vpack.c.bf16 %v503_v23, %v501_v22  ;;  %v1841_v27 = vpack.c.bf16 %v508_v25, %v506_v24  ;;  %v505_v28 = vld [vmem:[%s4032_s3 + $0x1c0] sm:$0xff]  ;;  %v507_v29 = vld [vmem:[%s4032_s3 + $0x1d0] sm:$0xff]  ;;  %v510_v31 = vld [vmem:[%s4032_s3 + $0x1e8] sm:$0xff] }
  0x45   :  { %1804 = vmatpush1.bf16.msra.mxu0 %v1803_v34  ;;  %v1843_v30 = vpack.c.bf16 %v507_v29, %v505_v28  ;;  %v512_v32 = vld [vmem:[%s4032_s3 + $0x1f8] sm:$0xff]  ;;  %v509_v12 = vld [vmem:[%s4032_s3 + $0x1e0] sm:$0xff]  ;;  %v511_v34 = vld [vmem:[%s4032_s3 + $0x1f0] sm:$0xff] }
  0x46   :  { %1806 = vmatprep.subr.bf16.mxu0 %v1805_v35  ;;  %v1845_v33 = vpack.c.bf16 %v512_v32, %v510_v31  ;;  %v1847_v35 = vpack.c.bf16 %v511_v34, %v509_v12  ;;  %v514_v36 = vld [vmem:[%s4032_s3 + $0x208] sm:$0xff]  ;;  %v516_v37 = vld [vmem:[%s4032_s3 + $0x218] sm:$0xff]  ;;  %v2810_v42 = vld [vmem:[%s4031_s2] sm:$0xff] }
  0x47   :  { %v1849_v38 = vpack.c.bf16 %v516_v37, %v514_v36  ;;  %v513_v49 = vld [vmem:[%s4032_s3 + $0x200] sm:$0xff]  ;;  %v515_v50 = vld [vmem:[%s4032_s3 + $0x210] sm:$0xff]  ;;  %v522_v61 = vld [vmem:[%s4032_s3 + $0x248] sm:$0xff] }
  0x48   :  { %v1851_v56 = vpack.c.bf16 %v515_v50, %v513_v49  ;;  %v519_v60 = vld [vmem:[%s4032_s3 + $0x230] sm:$0xff]  ;;  %v524_v62 = vld [vmem:[%s4032_s3 + $0x258] sm:$0xff]  ;;  %v521_v3 = vld [vmem:[%s4032_s3 + $0x240] sm:$0xff] }
  0x49   :  { %1808 = vmatpush1.bf16.msra.mxu0 %v1807_v40  ;;  %v2802_v40 = vshrl.u32 %v120_v39, 7  ;;  %v1857_v2 = vpack.c.bf16 %v524_v62, %v522_v61  ;;  %v523_v4 = vld [vmem:[%s4032_s3 + $0x250] sm:$0xff]  ;;  %v530_v16 = vld [vmem:[%s4032_s3 + $0x288] sm:$0xff]  ;;  %v532_v17 = vld [vmem:[%s4032_s3 + $0x298] sm:$0xff] }
  0x4a   :  { %1810 = vmatprep.subr.bf16.mxu0 %v1809_v41  ;;  %v1859_v10 = vpack.c.bf16 %v523_v4, %v521_v3  ;;  %v1865_v19 = vpack.c.bf16 %v532_v17, %v530_v16  ;;  %v534_v22 = vld [vmem:[%s4032_s3 + $0x2a8] sm:$0xff]  ;;  %v536_v23 = vld [vmem:[%s4032_s3 + $0x2b8] sm:$0xff]  ;;  %v539_v12 = vld [vmem:[%s4032_s3 + $0x2d0] sm:$0xff] }
  0x4b   :  { %v2805_v41 = vsub.s32 0, %v2802_v40  ;;  %v2813_v43 = vsub.s32 1, %v2802_v40  ;;  %v134_v54 = vsub.s32 3, %v2802_v40  ;;  %v1869_v25 = vpack.c.bf16 %v536_v23, %v534_v22  ;;  %v538_v28 = vld [vmem:[%s4032_s3 + $0x2c8] sm:$0xff]  ;;  %v540_v29 = vld [vmem:[%s4032_s3 + $0x2d8] sm:$0xff]  ;;  %v541_v39 = vld [vmem:[%s4032_s3 + $0x2e0] sm:$0xff] }
  0x4c   :  { %v1873_v32 = vpack.c.bf16 %v540_v29, %v538_v28  ;;  %v544_v36 = vld [vmem:[%s4032_s3 + $0x2f8] sm:$0xff]  ;;  %v545_v50 = vld [vmem:[%s4032_s3 + $0x300] sm:$0xff]  ;;  %v555_v62 = vld [vmem:[%s4032_s3 + $0x350] sm:$0xff] }
  0x4d   :  { %1812 = vmatpush1.bf16.msra.mxu0 %v1811_v46  ;;  %v123_v44 = vrot.slane %v2810_v42, %v2805_v41  ;;  %v127_v45 = vrot.slane %v2810_v42, %v2813_v43  ;;  %v135_v63 = vrot.slane %v2810_v42, %v134_v54  ;;  %v552_v54 = vld [vmem:[%s4032_s3 + $0x338] sm:$0xff]  ;;  %v553_v61 = vld [vmem:[%s4032_s3 + $0x340] sm:$0xff]  ;;  %v558_v16 = vld [vmem:[%s4032_s3 + $0x368] sm:$0xff] }
  0x4e   :  { %1814 = vmatprep.subr.bf16.mxu0 %v1813_v47  ;;  %v560_v17 = vld [vmem:[%s4032_s3 + $0x378] sm:$0xff]  ;;  %v1027_v23 = vld [vmem:[%s4034_s5 + $0x1c0] sm:$0xff]  ;;  %v562_v29 = vld [vmem:[%s4032_s3 + $0x388] sm:$0xff] }
  0x4f   :  { %v1034_v28 = vld [vmem:[%s4034_s5 + $0x1f8] sm:$0xff] }
  0x51   :  { %1816 = vmatpush1.bf16.msra.mxu0 %v1815_v52  ;;  %v518_v52 = vld [vmem:[%s4032_s3 + $0x228] sm:$0xff] }
  0x52   :  { %1818 = vmatprep.subr.bf16.mxu0 %v1817_v53  ;;  %v520_v53 = vld [vmem:[%s4032_s3 + $0x238] sm:$0xff] }
  0x55   :  { %1820 = vmatpush1.bf16.msra.mxu0 %v1819_v58  ;;  %v1853_v58 = vpack.c.bf16 %v520_v53, %v518_v52  ;;  %v550_v53 = vld [vmem:[%s4032_s3 + $0x328] sm:$0xff] }
  0x56   :  { %1822 = vmatprep.subr.bf16.mxu0 %v1821_v59  ;;  %v517_v59 = vld [vmem:[%s4032_s3 + $0x220] sm:$0xff] }
  0x59   :  { %1824 = vmatpush1.bf16.msra.mxu0 %v1823_v0  ;;  %v1855_v0 = vpack.c.bf16 %v519_v60, %v517_v59  ;;  %v554_v59 = vld [vmem:[%s4032_s3 + $0x348] sm:$0xff]  ;;  %v556_v60 = vld [vmem:[%s4032_s3 + $0x358] sm:$0xff] }
  0x5a   :  { %1826 = vmatprep.subr.bf16.mxu0 %v1825_v1 }
  0x5d   :  { %1828 = vmatpush1.bf16.msra.mxu0 %v1827_v6  ;;  %v526_v6 = vld [vmem:[%s4032_s3 + $0x268] sm:$0xff] }
  0x5e   :  { %1830 = vmatprep.subr.bf16.mxu0 %v1829_v8  ;;  %v528_v8 = vld [vmem:[%s4032_s3 + $0x278] sm:$0xff] }
  0x5f   :  { %v1861_v13 = vpack.c.bf16 %v528_v8, %v526_v6  ;;  %v1024_v6 = vld [vmem:[%s4034_s5 + $0x1a8] sm:$0xff]  ;;  %v1026_v8 = vld [vmem:[%s4034_s5 + $0x1b8] sm:$0xff] }
  0x61   :  { %1832 = vmatpush1.bf16.msra.mxu0 %v1831_v14  ;;  %v525_v14 = vld [vmem:[%s4032_s3 + $0x260] sm:$0xff] }
  0x62   :  { %1834 = vmatprep.subr.bf16.mxu0 %v1833_v15  ;;  %v527_v15 = vld [vmem:[%s4032_s3 + $0x270] sm:$0xff] }
  0x63   :  { %v1863_v18 = vpack.c.bf16 %v527_v15, %v525_v14  ;;  %v1025_v14 = vld [vmem:[%s4034_s5 + $0x1b0] sm:$0xff]  ;;  %v1028_v15 = vld [vmem:[%s4034_s5 + $0x1c8] sm:$0xff] }
  0x65   :  { %1836 = vmatpush1.bf16.msra.mxu0 %v1835_v20  ;;  %v529_v20 = vld [vmem:[%s4032_s3 + $0x280] sm:$0xff] }
  0x66   :  { %1838 = vmatprep.subr.bf16.mxu0 %v1837_v21  ;;  %v531_v21 = vld [vmem:[%s4032_s3 + $0x290] sm:$0xff] }
  0x67   :  { %v1867_v24 = vpack.c.bf16 %v531_v21, %v529_v20  ;;  %v1891_v20 = vpack.c.bf16 %v555_v62, %v553_v61  ;;  %v557_v21 = vld [vmem:[%s4032_s3 + $0x360] sm:$0xff]  ;;  %v130_v61 = vsub.s32 2, %v2802_v40 }
  0x69   :  { %1840 = vmatpush1.bf16.msra.mxu0 %v1839_v26  ;;  %v533_v26 = vld [vmem:[%s4032_s3 + $0x2a0] sm:$0xff] }
  0x6a   :  { %1842 = vmatprep.subr.bf16.mxu0 %v1841_v27  ;;  %v535_v27 = vld [vmem:[%s4032_s3 + $0x2b0] sm:$0xff] }
  0x6d   :  { %1844 = vmatpush1.bf16.msra.mxu0 %v1843_v30  ;;  %v1871_v30 = vpack.c.bf16 %v535_v27, %v533_v26  ;;  %v559_v26 = vld [vmem:[%s4032_s3 + $0x370] sm:$0xff]  ;;  %v1032_v27 = vld [vmem:[%s4034_s5 + $0x1e8] sm:$0xff] }
  0x6e   :  { %1846 = vmatprep.subr.bf16.mxu0 %v1845_v33  ;;  %v537_v33 = vld [vmem:[%s4032_s3 + $0x2c0] sm:$0xff] }
  0x6f   :  { %v1875_v37 = vpack.c.bf16 %v539_v12, %v537_v33  ;;  %v1895_v33 = vpack.c.bf16 %v559_v26, %v557_v21  ;;  %v561_v12 = vld [vmem:[%s4032_s3 + $0x380] sm:$0xff]  ;;  %v1045_v21 = vld [vmem:[%s4034_s5 + $0x250] sm:$0xff]  ;;  %v578_v26 = vld [vmem:[%s4032_s3 + $0x408] sm:$0xff] }
  0x71   :  { %1848 = vmatpush1.bf16.msra.mxu0 %v1847_v35  ;;  %v542_v35 = vld [vmem:[%s4032_s3 + $0x2e8] sm:$0xff] }
  0x72   :  { %1850 = vmatprep.subr.bf16.mxu0 %v1849_v38  ;;  %v1877_v38 = vpack.c.bf16 %v544_v36, %v542_v35  ;;  %v2021_v35 = vpack.c.bf16 %v1034_v28, %v1032_v27  ;;  %v1031_v36 = vld [vmem:[%s4034_s5 + $0x1e0] sm:$0xff]  ;;  %v580_v27 = vld [vmem:[%s4032_s3 + $0x418] sm:$0xff] }
  0xef   :  { %v225_v46 = vpop.f32.mrb[0].mxu0 }
  0xf0   :  { %v226_v47 = vadd.f32 %v225_v46, %v123_v44  ;;  %v227_v48 = vpop.f32.mrb[1].mxu0  ;;  %v543_v44 = vld [vmem:[%s4032_s3 + $0x2f0] sm:$0xff]  ;;  %v548_v46 = vld [vmem:[%s4032_s3 + $0x318] sm:$0xff] }
  0xf1   :  { %v228_v51 = vadd.f32 %v227_v48, %v127_v45  ;;  %v546_v45 = vld [vmem:[%s4032_s3 + $0x308] sm:$0xff] }
  0xf2   :  { %v442_v57 = vmax.f32 %v226_v47, 0.0  ;;  %v1879_v47 = vpack.c.bf16 %v543_v44, %v541_v39  ;;  %v1881_v49 = vpack.c.bf16 %v548_v46, %v546_v45  ;;  %v563_v39 = vld [vmem:[%s4032_s3 + $0x390] sm:$0xff]  ;;  %v1036_v44 = vld [vmem:[%s4034_s5 + $0x208] sm:$0xff]  ;;  %v1038_v45 = vld [vmem:[%s4034_s5 + $0x218] sm:$0xff] }
  0xf3   :  { %v443_v55 = vmax.f32 %v228_v51, 0.0  ;;  %v547_v51 = vld [vmem:[%s4032_s3 + $0x310] sm:$0xff]  ;;  %v566_v46 = vld [vmem:[%s4032_s3 + $0x3a8] sm:$0xff] }
  0xf5   :  { %749 = vmatprep.mubr.f32.mxu0 %v443_v55  ;;  %v2845_v1 = vpop.f32.mrb[0].mxu1  ;;  %v1883_v55 = vpack.c.bf16 %v547_v51, %v545_v50  ;;  %v1899_v50 = vpack.c.bf16 %v563_v39, %v561_v12  ;;  %v565_v51 = vld [vmem:[%s4032_s3 + $0x3a0] sm:$0xff]  ;;  %v1052_v39 = vld [vmem:[%s4034_s5 + $0x288] sm:$0xff] }
  0xf6   :  { %750 = vmatmul.mubr.f32.vlgmr.msra.gmra.mrb[4].mxu0 %v442_v57  ;;  %v298_v5 = vpop.f32.mrb[1].mxu1  ;;  %v549_v57 = vld [vmem:[%s4032_s3 + $0x320] sm:$0xff] }
  0xf7   :  { %1852 = vmatpush1.bf16.msra.mxu0 %v1851_v56  ;;  %v299_v9 = vadd.f32 %v298_v5, %v135_v63  ;;  %v1885_v56 = vpack.c.bf16 %v552_v54, %v550_v53  ;;  %v1020_v63 = vld [vmem:[%s4034_s5 + $0x188] sm:$0xff]  ;;  %v1021_v5 = vld [vmem:[%s4034_s5 + $0x190] sm:$0xff]  ;;  %v1035_v53 = vld [vmem:[%s4034_s5 + $0x200] sm:$0xff] }
  0xf8   :  { %1854 = vmatprep.subr.bf16.mxu0 %v1853_v58  ;;  %v551_v58 = vld [vmem:[%s4032_s3 + $0x330] sm:$0xff]  ;;  %v1047_v12 = vld [vmem:[%s4034_s5 + $0x260] sm:$0xff] }
  0xf9   :  { %v445_v11 = vmax.f32 %v299_v9, 0.0  ;;  %v1887_v3 = vpack.c.bf16 %v551_v58, %v549_v57  ;;  %v1889_v9 = vpack.c.bf16 %v556_v60, %v554_v59  ;;  %v1037_v54 = vld [vmem:[%s4034_s5 + $0x210] sm:$0xff]  ;;  %v1040_v57 = vld [vmem:[%s4034_s5 + $0x228] sm:$0xff]  ;;  %v1042_v58 = vld [vmem:[%s4034_s5 + $0x238] sm:$0xff] }
  0xfa   :  { %v570_v59 = vld [vmem:[%s4032_s3 + $0x3c8] sm:$0xff]  ;;  %v572_v60 = vld [vmem:[%s4032_s3 + $0x3d8] sm:$0xff]  ;;  %v2027_v62 = vpack.c.bf16 %v1037_v54, %v1035_v53  ;;  %v583_v54 = vld [vmem:[%s4032_s3 + $0x430] sm:$0xff] }
  0xfb   :  { %1856 = vmatpush1.bf16.msra.mxu0 %v1855_v0  ;;  %820 = vmatprep.mubr.f32.mxu0 %v445_v11  ;;  %v1022_v0 = vld [vmem:[%s4034_s5 + $0x198] sm:$0xff]  ;;  %v2013_v11 = vpack.c.bf16 %v1026_v8, %v1024_v6  ;;  %v1905_v6 = vpack.c.bf16 %v572_v60, %v570_v59  ;;  %v571_v8 = vld [vmem:[%s4032_s3 + $0x3d0] sm:$0xff] }
  0xfc   :  { %1858 = vmatprep.subr.bf16.mxu0 %v1857_v2  ;;  %v1019_v2 = vld [vmem:[%s4034_s5 + $0x180] sm:$0xff]  ;;  %v2009_v4 = vpack.c.bf16 %v1022_v0, %v1020_v63  ;;  %v588_v59 = vld [vmem:[%s4032_s3 + $0x458] sm:$0xff] }
  0xfd   :  { %v569_v0 = vld [vmem:[%s4032_s3 + $0x3c0] sm:$0xff] }
  0xfe   :  { %2010 = vmatprep.subr.bf16.mxu1 %v2009_v4  ;;  %v1039_v4 = vld [vmem:[%s4034_s5 + $0x220] sm:$0xff] }
  0xff   :  { %1860 = vmatpush1.bf16.msra.mxu0 %v1859_v10  ;;  %v2011_v10 = vpack.c.bf16 %v1021_v5, %v1019_v2  ;;  %v142_v2 = vsub.s32 5, %v2802_v40  ;;  %v1041_v5 = vld [vmem:[%s4034_s5 + $0x230] sm:$0xff] }
 0x100   :  { %1862 = vmatprep.subr.bf16.mxu0 %v1861_v13  ;;  %v1023_v13 = vld [vmem:[%s4034_s5 + $0x1a0] sm:$0xff] }
 0x101   :  { %2012 = vmatpush1.bf16.msra.mxu1 %v2011_v10  ;;  %v1046_v10 = vld [vmem:[%s4034_s5 + $0x258] sm:$0xff] }
 0x102   :  { %2014 = vmatprep.subr.bf16.mxu1 %v2013_v11  ;;  %v574_v11 = vld [vmem:[%s4032_s3 + $0x3e8] sm:$0xff] }
 0x103   :  { %1864 = vmatpush1.bf16.msra.mxu0 %v1863_v18  ;;  %v1030_v18 = vld [vmem:[%s4034_s5 + $0x1d8] sm:$0xff] }
 0x104   :  { %1866 = vmatprep.subr.bf16.mxu0 %v1865_v19  ;;  %v2015_v19 = vpack.c.bf16 %v1025_v14, %v1023_v13  ;;  %v2017_v22 = vpack.c.bf16 %v1030_v18, %v1028_v15  ;;  %v576_v13 = vld [vmem:[%s4032_s3 + $0x3f8] sm:$0xff]  ;;  %v131_v14 = vrot.slane %v2810_v42, %v130_v61  ;;  %v2031_v15 = vpack.c.bf16 %v1041_v5, %v1039_v4  ;;  %v587_v4 = vld [vmem:[%s4032_s3 + $0x450] sm:$0xff]  ;;  %v590_v5 = vld [vmem:[%s4032_s3 + $0x468] sm:$0xff] }
 0x105   :  { %v143_v18 = vrot.slane %v2810_v42, %v142_v2 }
 0x106   :  { %2016 = vmatpush1.bf16.msra.mxu1 %v2015_v19  ;;  %v297_v28 = vadd.f32 %v2845_v1, %v131_v14  ;;  %v577_v1 = vld [vmem:[%s4032_s3 + $0x400] sm:$0xff]  ;;  %v594_v14 = vld [vmem:[%s4032_s3 + $0x488] sm:$0xff] }
 0x107   :  { %1868 = vmatpush1.bf16.msra.mxu0 %v1867_v24  ;;  %v2895_v31 = vpop.f32.mrb[2].mxu0  ;;  %v1029_v24 = vld [vmem:[%s4034_s5 + $0x1d0] sm:$0xff]  ;;  %2018 = vmatprep.subr.bf16.mxu1 %v2017_v22  ;;  %v1909_v22 = vpack.c.bf16 %v576_v13, %v574_v11  ;;  %v589_v11 = vld [vmem:[%s4032_s3 + $0x460] sm:$0xff] }
 0x108   :  { %1870 = vmatprep.subr.bf16.mxu0 %v1869_v25  ;;  %v2903_v34 = vpop.f32.mrb[3].mxu0  ;;  %v1893_v25 = vpack.c.bf16 %v560_v17, %v558_v16  ;;  %v1907_v16 = vpack.c.bf16 %v571_v8, %v569_v0  ;;  %v573_v17 = vld [vmem:[%s4032_s3 + $0x3e0] sm:$0xff]  ;;  %v1057_v0 = vld [vmem:[%s4034_s5 + $0x2b0] sm:$0xff] }
 0x109   :  { %v591_v13 = vld [vmem:[%s4032_s3 + $0x470] sm:$0xff] }
 0x10b   :  { %1872 = vmatpush1.bf16.msra.mxu0 %v1871_v30  ;;  %v564_v30 = vld [vmem:[%s4032_s3 + $0x398] sm:$0xff] }
 0x10c   :  { %1874 = vmatprep.subr.bf16.mxu0 %v1873_v32  ;;  %v2019_v32 = vpack.c.bf16 %v1029_v24, %v1027_v23  ;;  %v575_v23 = vld [vmem:[%s4032_s3 + $0x3f0] sm:$0xff]  ;;  %v1048_v24 = vld [vmem:[%s4034_s5 + $0x268] sm:$0xff] }
 0x10d   :  { %v2923_v48 = vpop.f32.mrb[2].mxu1 }
 0x10e   :  { %v1694_v52 = vpop.f32.mrb[3].mxu1  ;;  %2020 = vmatpush1.bf16.msra.mxu1 %v2019_v32  ;;  %v370_v32 = vadd.f32 %v2903_v34, %v143_v18  ;;  %v579_v34 = vld [vmem:[%s4032_s3 + $0x410] sm:$0xff]  ;;  %v593_v18 = vld [vmem:[%s4032_s3 + $0x480] sm:$0xff] }
 0x10f   :  { %1876 = vmatpush1.bf16.msra.mxu0 %v1875_v37  ;;  %v1033_v37 = vld [vmem:[%s4034_s5 + $0x1f0] sm:$0xff]  ;;  %2022 = vmatprep.subr.bf16.mxu1 %v2021_v35  ;;  %v2025_v52 = vpack.c.bf16 %v1038_v45, %v1036_v44  ;;  %v1054_v44 = vld [vmem:[%s4034_s5 + $0x298] sm:$0xff]  ;;  %v444_v45 = vmax.f32 %v297_v28, 0.0 }
 0x110   :  { %1878 = vmatprep.subr.bf16.mxu0 %v1877_v38  ;;  %v1897_v38 = vpack.c.bf16 %v564_v30, %v562_v29  ;;  %v1911_v30 = vpack.c.bf16 %v575_v23, %v573_v17  ;;  %v1049_v35 = vld [vmem:[%s4034_s5 + $0x270] sm:$0xff] }
 0x113   :  { %1880 = vmatpush1.bf16.msra.mxu0 %v1879_v47  ;;  %v568_v47 = vld [vmem:[%s4032_s3 + $0x3b8] sm:$0xff] }
 0x114   :  { %1882 = vmatprep.subr.bf16.mxu0 %v1881_v49  ;;  %v2023_v49 = vpack.c.bf16 %v1033_v37, %v1031_v36  ;;  %v1913_v36 = vpack.c.bf16 %v580_v27, %v578_v26  ;;  %v582_v37 = vld [vmem:[%s4032_s3 + $0x428] sm:$0xff]  ;;  %v604_v27 = vld [vmem:[%s4032_s3 + $0x4d8] sm:$0xff] }
 0x115   :  { %v602_v26 = vld [vmem:[%s4032_s3 + $0x4c8] sm:$0xff] }
 0x116   :  { %2024 = vmatpush1.bf16.msra.mxu1 %v2023_v49  ;;  %v581_v49 = vld [vmem:[%s4032_s3 + $0x420] sm:$0xff] }
 0x117   :  { %1884 = vmatpush1.bf16.msra.mxu0 %v1883_v55  ;;  %v1901_v55 = vpack.c.bf16 %v568_v47, %v566_v46  ;;  %2026 = vmatprep.subr.bf16.mxu1 %v2025_v52  ;;  %v2039_v46 = vpack.c.bf16 %v1049_v35, %v1047_v12  ;;  %v1915_v47 = vpack.c.bf16 %v579_v34, %v577_v1  ;;  %v1053_v52 = vld [vmem:[%s4034_s5 + $0x290] sm:$0xff]  ;;  %v608_v12 = vld [vmem:[%s4032_s3 + $0x4f8] sm:$0xff]  ;;  %v605_v1 = vld [vmem:[%s4032_s3 + $0x4e0] sm:$0xff] }
 0x118   :  { %1886 = vmatprep.subr.bf16.mxu0 %v1885_v56  ;;  %v567_v56 = vld [vmem:[%s4032_s3 + $0x3b0] sm:$0xff]  ;;  %v1919_v61 = vpack.c.bf16 %v583_v54, %v581_v49  ;;  %v616_v49 = vld [vmem:[%s4032_s3 + $0x538] sm:$0xff]  ;;  %v618_v54 = vld [vmem:[%s4032_s3 + $0x548] sm:$0xff] }
 0x119   :  { %v1903_v63 = vpack.c.bf16 %v567_v56, %v565_v51  ;;  %v1051_v51 = vld [vmem:[%s4034_s5 + $0x280] sm:$0xff]  ;;  %v1056_v56 = vld [vmem:[%s4034_s5 + $0x2a8] sm:$0xff]  ;;  %v607_v34 = vld [vmem:[%s4032_s3 + $0x4f0] sm:$0xff] }
 0x11a   :  { %2028 = vmatpush1.bf16.msra.mxu1 %v2027_v62  ;;  %v2043_v60 = vpack.c.bf16 %v1053_v52, %v1051_v51  ;;  %v613_v52 = vld [vmem:[%s4032_s3 + $0x520] sm:$0xff] }
 0x11b   :  { %1888 = vmatpush1.bf16.msra.mxu0 %v1887_v3  ;;  %v2029_v3 = vpack.c.bf16 %v1042_v58, %v1040_v57  ;;  %v1058_v57 = vld [vmem:[%s4034_s5 + $0x2b8] sm:$0xff]  ;;  %v586_v58 = vld [vmem:[%s4032_s3 + $0x448] sm:$0xff] }
 0x11c   :  { %1890 = vmatprep.subr.bf16.mxu0 %v1889_v9  ;;  %v1044_v9 = vld [vmem:[%s4034_s5 + $0x248] sm:$0xff]  ;;  %v2045_v62 = vpack.c.bf16 %v1058_v57, %v1056_v56  ;;  %v1921_v2 = vpack.c.bf16 %v588_v59, %v586_v58  ;;  %v617_v58 = vld [vmem:[%s4032_s3 + $0x540] sm:$0xff]  ;;  %v619_v59 = vld [vmem:[%s4032_s3 + $0x550] sm:$0xff] }
 0x11d   :  { %2030 = vmatprep.subr.bf16.mxu1 %v2029_v3  ;;  %v2033_v19 = vpack.c.bf16 %v1046_v10, %v1044_v9  ;;  %v585_v3 = vld [vmem:[%s4032_s3 + $0x440] sm:$0xff] }
 0x11e   :  { %2032 = vmatpush1.bf16.msra.mxu1 %v2031_v15  ;;  %v1923_v9 = vpack.c.bf16 %v587_v4, %v585_v3  ;;  %v596_v15 = vld [vmem:[%s4032_s3 + $0x498] sm:$0xff]  ;;  %v626_v3 = vld [vmem:[%s4032_s3 + $0x588] sm:$0xff] }
 0x11f   :  { %1892 = vmatpush1.bf16.msra.mxu0 %v1891_v20  ;;  %v1043_v20 = vld [vmem:[%s4034_s5 + $0x240] sm:$0xff]  ;;  %2034 = vmatprep.subr.bf16.mxu1 %v2033_v19  ;;  %v1929_v17 = vpack.c.bf16 %v596_v15, %v594_v14  ;;  %v595_v19 = vld [vmem:[%s4032_s3 + $0x490] sm:$0xff]  ;;  %v628_v4 = vld [vmem:[%s4032_s3 + $0x598] sm:$0xff] }
 0x120   :  { %1894 = vmatprep.subr.bf16.mxu0 %v1893_v25  ;;  %v1050_v25 = vld [vmem:[%s4034_s5 + $0x278] sm:$0xff]  ;;  %v2035_v29 = vpack.c.bf16 %v1045_v21, %v1043_v20  ;;  %v598_v20 = vld [vmem:[%s4032_s3 + $0x4a8] sm:$0xff]  ;;  %v629_v15 = vld [vmem:[%s4032_s3 + $0x5a0] sm:$0xff] }
 0x121   :  { %v600_v21 = vld [vmem:[%s4032_s3 + $0x4b8] sm:$0xff] }
 0x122   :  { %2036 = vmatpush1.bf16.msra.mxu1 %v2035_v29  ;;  %v1933_v23 = vpack.c.bf16 %v600_v21, %v598_v20  ;;  %v1937_v29 = vpack.c.bf16 %v604_v27, %v602_v26 }
 0x123   :  { %1896 = vmatpush1.bf16.msra.mxu0 %v1895_v33  ;;  %v2037_v33 = vpack.c.bf16 %v1050_v25, %v1048_v24  ;;  %v597_v24 = vld [vmem:[%s4032_s3 + $0x4a0] sm:$0xff]  ;;  %v599_v25 = vld [vmem:[%s4032_s3 + $0x4b0] sm:$0xff] }
 0x124   :  { %1898 = vmatprep.subr.bf16.mxu0 %v1897_v38  ;;  %v584_v38 = vld [vmem:[%s4032_s3 + $0x438] sm:$0xff]  ;;  %v1935_v28 = vpack.c.bf16 %v599_v25, %v597_v24  ;;  %v638_v24 = vld [vmem:[%s4032_s3 + $0x5e8] sm:$0xff] }
 0x125   :  { %2038 = vmatprep.subr.bf16.mxu1 %v2037_v33  ;;  %v1917_v53 = vpack.c.bf16 %v584_v38, %v582_v37  ;;  %v606_v33 = vld [vmem:[%s4032_s3 + $0x4e8] sm:$0xff]  ;;  %v612_v38 = vld [vmem:[%s4032_s3 + $0x518] sm:$0xff] }
 0x126   :  { %2040 = vmatpush1.bf16.msra.mxu1 %v2039_v46  ;;  %v610_v37 = vld [vmem:[%s4032_s3 + $0x508] sm:$0xff]  ;;  %v611_v46 = vld [vmem:[%s4032_s3 + $0x510] sm:$0xff]  ;;  %v640_v25 = vld [vmem:[%s4032_s3 + $0x5f8] sm:$0xff] }
 0x127   :  { %1900 = vmatpush1.bf16.msra.mxu0 %v1899_v50  ;;  %v447_v50 = vmax.f32 %v370_v32, 0.0  ;;  %v603_v32 = vld [vmem:[%s4032_s3 + $0x4d0] sm:$0xff] }
 0x128   :  { %1902 = vmatprep.subr.bf16.mxu0 %v1901_v55  ;;  %v2041_v55 = vpack.c.bf16 %v1054_v44, %v1052_v39  ;;  %v1943_v39 = vpack.c.bf16 %v607_v34, %v605_v1  ;;  %v1945_v44 = vpack.c.bf16 %v612_v38, %v610_v37  ;;  %v641_v1 = vld [vmem:[%s4032_s3 + $0x600] sm:$0xff]  ;;  %v643_v34 = vld [vmem:[%s4032_s3 + $0x610] sm:$0xff]  ;;  %v646_v37 = vld [vmem:[%s4032_s3 + $0x628] sm:$0xff] }
 0x12a   :  { %2042 = vmatprep.subr.bf16.mxu1 %v2041_v55  ;;  %v620_v55 = vld [vmem:[%s4032_s3 + $0x558] sm:$0xff] }
 0x12b   :  { %1904 = vmatpush1.bf16.msra.mxu0 %v1903_v63  ;;  %v1055_v63 = vld [vmem:[%s4034_s5 + $0x2a0] sm:$0xff]  ;;  %2044 = vmatpush1.bf16.msra.mxu1 %v2043_v60  ;;  %v1953_v57 = vpack.c.bf16 %v620_v55, %v618_v54  ;;  %v622_v60 = vld [vmem:[%s4032_s3 + $0x568] sm:$0xff]  ;;  %v656_v55 = vld [vmem:[%s4032_s3 + $0x678] sm:$0xff] }
 0x12c   :  { %1906 = vmatprep.subr.bf16.mxu0 %v1905_v6  ;;  %v592_v6 = vld [vmem:[%s4032_s3 + $0x478] sm:$0xff]  ;;  %v2047_v8 = vpack.c.bf16 %v1057_v0, %v1055_v63  ;;  %2046 = vmatprep.subr.bf16.mxu1 %v2045_v62  ;;  %v1955_v62 = vpack.c.bf16 %v619_v59, %v617_v58  ;;  %v621_v0 = vld [vmem:[%s4032_s3 + $0x560] sm:$0xff]  ;;  %v654_v54 = vld [vmem:[%s4032_s3 + $0x668] sm:$0xff] }
 0x12d   :  { %v1925_v10 = vpack.c.bf16 %v592_v6, %v590_v5  ;;  %v1961_v6 = vpack.c.bf16 %v628_v4, %v626_v3  ;;  %v655_v58 = vld [vmem:[%s4032_s3 + $0x670] sm:$0xff]  ;;  %v658_v59 = vld [vmem:[%s4032_s3 + $0x688] sm:$0xff]  ;;  %v664_v3 = vld [vmem:[%s4032_s3 + $0x6b8] sm:$0xff] }
 0x12f   :  { %1908 = vmatpush1.bf16.msra.mxu0 %v1907_v16  ;;  %2048 = vmatpush1.bf16.msra.mxu1 %v2047_v8  ;;  %v1927_v16 = vpack.c.bf16 %v591_v13, %v589_v11  ;;  %v625_v8 = vld [vmem:[%s4032_s3 + $0x580] sm:$0xff]  ;;  %v632_v11 = vld [vmem:[%s4032_s3 + $0x5b8] sm:$0xff] }
 0x130   :  { %1910 = vmatprep.subr.bf16.mxu0 %v1909_v22  ;;  %v1931_v22 = vpack.c.bf16 %v595_v19, %v593_v18  ;;  %v636_v18 = vld [vmem:[%s4032_s3 + $0x5d8] sm:$0xff]  ;;  %v138_v19 = vsub.s32 4, %v2802_v40 }
 0x132   :  { %v139_v26 = vrot.slane %v2810_v42, %v138_v19 }
 0x133   :  { %1912 = vmatpush1.bf16.msra.mxu0 %v1911_v30  ;;  %v601_v30 = vld [vmem:[%s4032_s3 + $0x4c0] sm:$0xff] }
 0x134   :  { %1914 = vmatprep.subr.bf16.mxu0 %v1913_v36  ;;  %v1939_v35 = vpack.c.bf16 %v603_v32, %v601_v30  ;;  %v1941_v36 = vpack.c.bf16 %v608_v12, %v606_v33  ;;  %v639_v30 = vld [vmem:[%s4032_s3 + $0x5f0] sm:$0xff]  ;;  %v642_v32 = vld [vmem:[%s4032_s3 + $0x608] sm:$0xff]  ;;  %v644_v33 = vld [vmem:[%s4032_s3 + $0x618] sm:$0xff]  ;;  %v368_v12 = vadd.f32 %v2895_v31, %v139_v26 }
 0x135   :  { %v648_v31 = vld [vmem:[%s4032_s3 + $0x638] sm:$0xff] }
 0x136   :  { %821 = vmatmul.mubr.f32.vlgmr.msra.gmra.mrb[4].mxu0 %v444_v45  ;;  %v609_v45 = vld [vmem:[%s4032_s3 + $0x500] sm:$0xff]  ;;  %v446_v38 = vmax.f32 %v368_v12, 0.0  ;;  %v1062_v26 = vld [vmem:[%s4034_s5 + $0x2d8] sm:$0xff] }
 0x137   :  { %1916 = vmatpush1.bf16.msra.mxu0 %v1915_v47  ;;  %891 = vmatprep.mubr.f32.mxu0 %v447_v50  ;;  %v614_v47 = vld [vmem:[%s4032_s3 + $0x528] sm:$0xff]  ;;  %v1947_v50 = vpack.c.bf16 %v611_v46, %v609_v45  ;;  %v645_v45 = vld [vmem:[%s4032_s3 + $0x620] sm:$0xff]  ;;  %v647_v46 = vld [vmem:[%s4032_s3 + $0x630] sm:$0xff] }
 0x138   :  { %1918 = vmatprep.subr.bf16.mxu0 %v1917_v53  ;;  %v1949_v51 = vpack.c.bf16 %v616_v49, %v614_v47  ;;  %v615_v53 = vld [vmem:[%s4032_s3 + $0x530] sm:$0xff]  ;;  %v650_v47 = vld [vmem:[%s4032_s3 + $0x648] sm:$0xff]  ;;  %v652_v49 = vld [vmem:[%s4032_s3 + $0x658] sm:$0xff] }
 0x139   :  { %v1951_v56 = vpack.c.bf16 %v615_v53, %v613_v52  ;;  %v649_v52 = vld [vmem:[%s4032_s3 + $0x640] sm:$0xff]  ;;  %v651_v53 = vld [vmem:[%s4032_s3 + $0x650] sm:$0xff] }
 0x13a   :  { %v1063_v12 = vld [vmem:[%s4034_s5 + $0x2e0] sm:$0xff] }
 0x13b   :  { %1920 = vmatpush1.bf16.msra.mxu0 %v1919_v61  ;;  %v624_v61 = vld [vmem:[%s4032_s3 + $0x578] sm:$0xff] }
 0x13c   :  { %1922 = vmatprep.subr.bf16.mxu0 %v1921_v2  ;;  %v1957_v63 = vpack.c.bf16 %v624_v61, %v622_v60  ;;  %v623_v2 = vld [vmem:[%s4032_s3 + $0x570] sm:$0xff]  ;;  %v660_v60 = vld [vmem:[%s4032_s3 + $0x698] sm:$0xff] }
 0x13d   :  { %v1959_v5 = vpack.c.bf16 %v623_v2, %v621_v0  ;;  %v659_v0 = vld [vmem:[%s4032_s3 + $0x690] sm:$0xff]  ;;  %v662_v2 = vld [vmem:[%s4032_s3 + $0x6a8] sm:$0xff] }
 0x13f   :  { %1924 = vmatpush1.bf16.msra.mxu0 %v1923_v9  ;;  %v627_v9 = vld [vmem:[%s4032_s3 + $0x590] sm:$0xff] }
 0x140   :  { %1926 = vmatprep.subr.bf16.mxu0 %v1925_v10  ;;  %v630_v10 = vld [vmem:[%s4032_s3 + $0x5a8] sm:$0xff]  ;;  %v1963_v13 = vpack.c.bf16 %v627_v9, %v625_v8  ;;  %v663_v8 = vld [vmem:[%s4032_s3 + $0x6b0] sm:$0xff] }
 0x141   :  { %v1965_v14 = vpack.c.bf16 %v632_v11, %v630_v10  ;;  %v666_v9 = vld [vmem:[%s4032_s3 + $0x6c8] sm:$0xff]  ;;  %v668_v10 = vld [vmem:[%s4032_s3 + $0x6d8] sm:$0xff]  ;;  %v146_v11 = vsub.s32 6, %v2802_v40 }
 0x142   :  { %v672_v40 = vld [vmem:[%s4032_s3 + $0x6f8] sm:$0xff] }
 0x143   :  { %1928 = vmatpush1.bf16.msra.mxu0 %v1927_v16  ;;  %v631_v16 = vld [vmem:[%s4032_s3 + $0x5b0] sm:$0xff] }
 0x144   :  { %1930 = vmatprep.subr.bf16.mxu0 %v1929_v17  ;;  %v634_v17 = vld [vmem:[%s4032_s3 + $0x5c8] sm:$0xff]  ;;  %v1967_v20 = vpack.c.bf16 %v631_v16, %v629_v15  ;;  %v665_v15 = vld [vmem:[%s4032_s3 + $0x6c0] sm:$0xff]  ;;  %v667_v16 = vld [vmem:[%s4032_s3 + $0x6d0] sm:$0xff] }
 0x145   :  { %v1969_v21 = vpack.c.bf16 %v636_v18, %v634_v17  ;;  %v670_v17 = vld [vmem:[%s4032_s3 + $0x6e8] sm:$0xff]  ;;  %v147_v18 = vrot.slane %v2810_v42, %v146_v11  ;;  %v2003_v19 = vpack.c.bf16 %v667_v16, %v665_v15  ;;  %v990_v11 = vld [vmem:[%s4034_s5 + $0x98] sm:$0xff]  ;;  %v987_v15 = vld [vmem:[%s4034_s5 + $0x80] sm:$0xff] }
 0x146   :  { %v1060_v42 = vld [vmem:[%s4034_s5 + $0x2c8] sm:$0xff]  ;;  %v989_v16 = vld [vmem:[%s4034_s5 + $0x90] sm:$0xff] }
 0x147   :  { %1932 = vmatpush1.bf16.msra.mxu0 %v1931_v22  ;;  %v633_v22 = vld [vmem:[%s4032_s3 + $0x5c0] sm:$0xff] }
 0x148   :  { %1934 = vmatprep.subr.bf16.mxu0 %v1933_v23  ;;  %v635_v23 = vld [vmem:[%s4032_s3 + $0x5d0] sm:$0xff] }
 0x149   :  { %v1971_v27 = vpack.c.bf16 %v635_v23, %v633_v22  ;;  %v671_v22 = vld [vmem:[%s4032_s3 + $0x6f0] sm:$0xff]  ;;  %v439_v23 = vadd.f32 %v2923_v48, %v147_v18  ;;  %v2075_v18 = vpack.c.bf16 %v989_v16, %v987_v15  ;;  %v1227_v16 = vld [vmem:[%s4034_s5 + $0x340] sm:$0xff] }
 0x14a   :  { %v1061_v48 = vld [vmem:[%s4034_s5 + $0x2d0] sm:$0xff] }
 0x14b   :  { %1936 = vmatpush1.bf16.msra.mxu0 %v1935_v28  ;;  %v1973_v28 = vpack.c.bf16 %v640_v25, %v638_v24  ;;  %v448_v25 = vmax.f32 %v439_v23, 0.0  ;;  %v998_v23 = vld [vmem:[%s4034_s5 + $0xd8] sm:$0xff] }
 0x14c   :  { %1938 = vmatprep.subr.bf16.mxu0 %v1937_v29  ;;  %v637_v29 = vld [vmem:[%s4032_s3 + $0x5e0] sm:$0xff] }
 0x14f   :  { %1940 = vmatpush1.bf16.msra.mxu0 %v1939_v35  ;;  %v1975_v35 = vpack.c.bf16 %v639_v30, %v637_v29  ;;  %v1064_v30 = vld [vmem:[%s4034_s5 + $0x2e8] sm:$0xff] }
 0x150   :  { %1942 = vmatprep.subr.bf16.mxu0 %v1941_v36  ;;  %v1977_v36 = vpack.c.bf16 %v644_v33, %v642_v32  ;;  %v1066_v32 = vld [vmem:[%s4034_s5 + $0x2f8] sm:$0xff] }
 0x151   :  { %v2053_v33 = vpack.c.bf16 %v1066_v32, %v1064_v30  ;;  %v999_v30 = vld [vmem:[%s4034_s5 + $0xe0] sm:$0xff]  ;;  %v1001_v32 = vld [vmem:[%s4034_s5 + $0xf0] sm:$0xff] }
 0x153   :  { %1944 = vmatpush1.bf16.msra.mxu0 %v1943_v39  ;;  %v1979_v39 = vpack.c.bf16 %v643_v34, %v641_v1  ;;  %v972_v1 = vld [vmem:[%s4034_s5 + $0x8] sm:$0xff]  ;;  %v974_v34 = vld [vmem:[%s4034_s5 + $0x18] sm:$0xff] }
 0x154   :  { %1946 = vmatprep.subr.bf16.mxu0 %v1945_v44  ;;  %v1981_v44 = vpack.c.bf16 %v648_v31, %v646_v37  ;;  %v2057_v37 = vpack.c.bf16 %v974_v34, %v972_v1  ;;  %v673_v31 = vld [vmem:[%s4033_s4] sm:$0x3]  ;;  %v1005_v34 = vld [vmem:[%s4034_s5 + $0x110] sm:$0xff] }
 0x155   :  { %v1003_v1 = vld [vmem:[%s4034_s5 + $0x100] sm:$0xff] }
 0x157   :  { %1948 = vmatpush1.bf16.msra.mxu0 %v1947_v50  ;;  %v1983_v50 = vpack.c.bf16 %v647_v46, %v645_v45 }
 0x158   :  { %1950 = vmatprep.subr.bf16.mxu0 %v1949_v51  ;;  %v1985_v51 = vpack.c.bf16 %v652_v49, %v650_v47 }
 0x15b   :  { %1952 = vmatpush1.bf16.msra.mxu0 %v1951_v56  ;;  %v1989_v56 = vpack.c.bf16 %v656_v55, %v654_v54  ;;  %v978_v54 = vld [vmem:[%s4034_s5 + $0x38] sm:$0xff] }
 0x15c   :  { %1954 = vmatprep.subr.bf16.mxu0 %v1953_v57  ;;  %v653_v57 = vld [vmem:[%s4032_s3 + $0x660] sm:$0xff] }
 0x15d   :  { %v1991_v61 = vpack.c.bf16 %v655_v58, %v653_v57  ;;  %v975_v58 = vld [vmem:[%s4034_s5 + $0x20] sm:$0xff] }
 0x15f   :  { %1956 = vmatpush1.bf16.msra.mxu0 %v1955_v62  ;;  %v1993_v62 = vpack.c.bf16 %v660_v60, %v658_v59  ;;  %v977_v59 = vld [vmem:[%s4034_s5 + $0x30] sm:$0xff]  ;;  %v980_v60 = vld [vmem:[%s4034_s5 + $0x48] sm:$0xff] }
 0x160   :  { %1958 = vmatprep.subr.bf16.mxu0 %v1957_v63  ;;  %v657_v63 = vld [vmem:[%s4032_s3 + $0x680] sm:$0xff] }
 0x161   :  { %v1995_v4 = vpack.c.bf16 %v659_v0, %v657_v63  ;;  %v979_v0 = vld [vmem:[%s4034_s5 + $0x40] sm:$0xff] }
 0x163   :  { %1960 = vmatpush1.bf16.msra.mxu0 %v1959_v5  ;;  %v1997_v5 = vpack.c.bf16 %v664_v3, %v662_v2  ;;  %v981_v2 = vld [vmem:[%s4034_s5 + $0x50] sm:$0xff]  ;;  %v984_v3 = vld [vmem:[%s4034_s5 + $0x68] sm:$0xff] }
 0x164   :  { %1962 = vmatprep.subr.bf16.mxu0 %v1961_v6  ;;  %v661_v6 = vld [vmem:[%s4032_s3 + $0x6a0] sm:$0xff] }
 0x167   :  { %1964 = vmatpush1.bf16.msra.mxu0 %v1963_v13  ;;  %v1999_v13 = vpack.c.bf16 %v663_v8, %v661_v6  ;;  %v983_v8 = vld [vmem:[%s4034_s5 + $0x60] sm:$0xff] }
 0x168   :  { %1966 = vmatprep.subr.bf16.mxu0 %v1965_v14  ;;  %v2001_v14 = vpack.c.bf16 %v668_v10, %v666_v9  ;;  %v985_v9 = vld [vmem:[%s4034_s5 + $0x70] sm:$0xff]  ;;  %v988_v10 = vld [vmem:[%s4034_s5 + $0x88] sm:$0xff] }
 0x16b   :  { %1968 = vmatpush1.bf16.msra.mxu0 %v1967_v20  ;;  %v2005_v20 = vpack.c.bf16 %v672_v40, %v670_v17  ;;  %v992_v17 = vld [vmem:[%s4034_s5 + $0xa8] sm:$0xff]  ;;  %v994_v40 = vld [vmem:[%s4034_s5 + $0xb8] sm:$0xff] }
 0x16c   :  { %1970 = vmatprep.subr.bf16.mxu0 %v1969_v21  ;;  %v669_v21 = vld [vmem:[%s4032_s3 + $0x6e0] sm:$0xff]  ;;  %s2278_s3 = smov [#allocation2]  }
 0x16d   :  { %v2007_v24 = vpack.c.bf16 %v671_v22, %v669_v21  ;;  %v993_v21 = vld [vmem:[%s4034_s5 + $0xb0] sm:$0xff]  ;;  %v996_v22 = vld [vmem:[%s4034_s5 + $0xc8] sm:$0xff] }
 0x16f   :  { %1972 = vmatpush1.bf16.msra.mxu0 %v1971_v27  ;;  %v2049_v27 = vpack.c.bf16 %v1062_v26, %v1060_v42  ;;  %v995_v42 = vld [vmem:[%s4034_s5 + $0xc0] sm:$0xff]  ;;  %v997_v26 = vld [vmem:[%s4034_s5 + $0xd0] sm:$0xff] }
 0x170   :  { %1974 = vmatprep.subr.bf16.mxu0 %v1973_v28  ;;  %v1059_v28 = vld [vmem:[%s4034_s5 + $0x2c0] sm:$0xff] }
 0x171   :  { %v2051_v29 = vpack.c.bf16 %v1061_v48, %v1059_v28  ;;  %2050 = vmatprep.subr.bf16.mxu1 %v2049_v27  ;;  %v1000_v27 = vld [vmem:[%s4034_s5 + $0xe8] sm:$0xff]  ;;  %v1002_v28 = vld [vmem:[%s4034_s5 + $0xf8] sm:$0xff]  ;;  %v2083_v48 = vpack.c.bf16 %v997_v26, %v995_v42  ;;  %v1235_v26 = vld [vmem:[%s4034_s5 + $0x380] sm:$0xff] }
 0x173   :  { %1976 = vmatpush1.bf16.msra.mxu0 %v1975_v35  ;;  %2052 = vmatpush1.bf16.msra.mxu1 %v2051_v29  ;;  %v1065_v35 = vld [vmem:[%s4034_s5 + $0x2f0] sm:$0xff]  ;;  %v2085_v29 = vpack.c.bf16 %v1002_v28, %v1000_v27  ;;  %v1240_v28 = vld [vmem:[%s4034_s5 + $0x3a8] sm:$0xff] }
 0x174   :  { %1978 = vmatprep.subr.bf16.mxu0 %v1977_v36  ;;  %v2055_v36 = vpack.c.bf16 %v1065_v35, %v1063_v12  ;;  %2054 = vmatprep.subr.bf16.mxu1 %v2053_v33  ;;  %v1004_v33 = vld [vmem:[%s4034_s5 + $0x108] sm:$0xff]  ;;  %v1006_v12 = vld [vmem:[%s4034_s5 + $0x118] sm:$0xff]  ;;  %v2087_v35 = vpack.c.bf16 %v1001_v32, %v999_v30  ;;  %v1237_v27 = vld [vmem:[%s4034_s5 + $0x390] sm:$0xff] }
 0x175   :  { %v1239_v32 = vld [vmem:[%s4034_s5 + $0x3a0] sm:$0xff] }
 0x176   :  { %892 = vmatmul.mubr.f32.vlgmr.msra.gmra.mrb[4].mxu0 %v446_v38  ;;  %v678_v38 = vrot.slane %v673_v31, %v2805_v41 }
 0x177   :  { %1980 = vmatpush1.bf16.msra.mxu0 %v1979_v39  ;;  %962 = vmatprep.mubr.f32.mxu0 %v2275_v7  ;;  %v1987_v7 = vpack.c.bf16 %v651_v53, %v649_v52  ;;  %v682_v39 = vrot.slane %v673_v31, %v2813_v43  ;;  %v976_v53 = vld [vmem:[%s4034_s5 + $0x28] sm:$0xff]  ;;  %v1010_v31 = vld [vmem:[%s4034_s5 + $0x138] sm:$0xff] }
 0x178   :  { %1982 = vmatprep.subr.bf16.mxu0 %v1981_v44  ;;  %2056 = vmatpush1.bf16.msra.mxu1 %v2055_v36  ;;  %v2061_v57 = vpack.c.bf16 %v978_v54, %v976_v53  ;;  %v2089_v36 = vpack.c.bf16 %v1006_v12, %v1004_v33  ;;  %v1011_v53 = vld [vmem:[%s4034_s5 + $0x140] sm:$0xff]  ;;  %v1013_v54 = vld [vmem:[%s4034_s5 + $0x150] sm:$0xff]  ;;  %v1244_v12 = vld [vmem:[%s4034_s5 + $0x3c8] sm:$0xff] }
 0x179   :  { %2058 = vmatprep.subr.bf16.mxu1 %v2057_v37  ;;  %v1008_v37 = vld [vmem:[%s4034_s5 + $0x128] sm:$0xff]  ;;  %v1241_v33 = vld [vmem:[%s4034_s5 + $0x3b0] sm:$0xff] }
 0x17b   :  { %1984 = vmatpush1.bf16.msra.mxu0 %v1983_v50  ;;  %v971_v50 = vld [vmem:[%s4034_s5] sm:$0xff] }
 0x17c   :  { %1986 = vmatprep.subr.bf16.mxu0 %v1985_v51  ;;  %v973_v51 = vld [vmem:[%s4034_s5 + $0x10] sm:$0xff] }
 0x17f   :  { %1988 = vmatpush1.bf16.msra.mxu0 %v1987_v7  ;;  %v2059_v7 = vpack.c.bf16 %v973_v51, %v971_v50 }
 0x180   :  { %1990 = vmatprep.subr.bf16.mxu0 %v1989_v56 }
 0x183   :  { %1992 = vmatpush1.bf16.msra.mxu0 %v1991_v61  ;;  %v982_v61 = vld [vmem:[%s4034_s5 + $0x58] sm:$0xff] }
 0x184   :  { %1994 = vmatprep.subr.bf16.mxu0 %v1993_v62  ;;  %v2063_v62 = vpack.c.bf16 %v977_v59, %v975_v58  ;;  %v2065_v63 = vpack.c.bf16 %v982_v61, %v980_v60  ;;  %v1015_v58 = vld [vmem:[%s4034_s5 + $0x160] sm:$0xff]  ;;  %v1017_v59 = vld [vmem:[%s4034_s5 + $0x170] sm:$0xff]  ;;  %v1220_v60 = vld [vmem:[%s4034_s5 + $0x308] sm:$0xff] }
 0x185   :  { %v1222_v61 = vld [vmem:[%s4034_s5 + $0x318] sm:$0xff] }
 0x187   :  { %1996 = vmatpush1.bf16.msra.mxu0 %v1995_v4  ;;  %v986_v4 = vld [vmem:[%s4034_s5 + $0x78] sm:$0xff] }
 0x188   :  { %1998 = vmatprep.subr.bf16.mxu0 %v1997_v5  ;;  %v2067_v5 = vpack.c.bf16 %v981_v2, %v979_v0  ;;  %v2069_v6 = vpack.c.bf16 %v986_v4, %v984_v3  ;;  %v1219_v0 = vld [vmem:[%s4034_s5 + $0x300] sm:$0xff]  ;;  %v1221_v2 = vld [vmem:[%s4034_s5 + $0x310] sm:$0xff]  ;;  %v1224_v3 = vld [vmem:[%s4034_s5 + $0x328] sm:$0xff] }
 0x189   :  { %v1226_v4 = vld [vmem:[%s4034_s5 + $0x338] sm:$0xff] }
 0x18b   :  { %2000 = vmatpush1.bf16.msra.mxu0 %v1999_v13  ;;  %v2071_v13 = vpack.c.bf16 %v985_v9, %v983_v8  ;;  %v1223_v8 = vld [vmem:[%s4034_s5 + $0x320] sm:$0xff]  ;;  %v1225_v9 = vld [vmem:[%s4034_s5 + $0x330] sm:$0xff] }
 0x18c   :  { %2002 = vmatprep.subr.bf16.mxu0 %v2001_v14  ;;  %v2073_v14 = vpack.c.bf16 %v990_v11, %v988_v10  ;;  %v1228_v11 = vld [vmem:[%s4034_s5 + $0x348] sm:$0xff] }
 0x18f   :  { %2004 = vmatpush1.bf16.msra.mxu0 %v2003_v19  ;;  %v2077_v19 = vpack.c.bf16 %v994_v40, %v992_v17  ;;  %v1229_v17 = vld [vmem:[%s4034_s5 + $0x350] sm:$0xff]  ;;  %v1232_v40 = vld [vmem:[%s4034_s5 + $0x368] sm:$0xff] }
 0x190   :  { %2006 = vmatprep.subr.bf16.mxu0 %v2005_v20  ;;  %v991_v20 = vld [vmem:[%s4034_s5 + $0xa0] sm:$0xff] }
 0x193   :  { %2008 = vmatpush1.bf16.msra.mxu0 %v2007_v24  ;;  %v2079_v24 = vpack.c.bf16 %v993_v21, %v991_v20  ;;  %v1231_v21 = vld [vmem:[%s4034_s5 + $0x360] sm:$0xff] }
 0x196   :  { %963 = vmatmul.mubr.f32.vlgmr.msra.gmra.mrb[4].mxu0 %v448_v25  ;;  %v2081_v25 = vpack.c.bf16 %v998_v23, %v996_v22  ;;  %v1233_v22 = vld [vmem:[%s4034_s5 + $0x370] sm:$0xff]  ;;  %v1236_v23 = vld [vmem:[%s4034_s5 + $0x388] sm:$0xff] }
 0x269   :  { %v964_v44 = vpop.f32.mrb[4].mxu0 }
 0x26a   :  { %v2233_v45 = vadd.f32 %v964_v44, %v678_v38  ;;  %v966_v46 = vpop.f32.mrb[5].mxu0  ;;  %v2091_v38 = vpack.c.bf16 %v1005_v34, %v1003_v1  ;;  %v1007_v44 = vld [vmem:[%s4034_s5 + $0x120] sm:$0xff] }
 0x26b   :  { %v2234_v47 = vadd.f32 %v966_v46, %v682_v39  ;;  %v2093_v39 = vpack.c.bf16 %v1010_v31, %v1008_v37  ;;  %v1012_v46 = vld [vmem:[%s4034_s5 + $0x148] sm:$0xff]  ;;  %v1243_v34 = vld [vmem:[%s4034_s5 + $0x3c0] sm:$0xff]  ;;  %v1245_v37 = vld [vmem:[%s4034_s5 + $0x3d0] sm:$0xff] }
 0x26c   :  { %v3471_v49 = vmax.f32 %v2233_v45, 0.0  ;;  %v1009_v45 = vld [vmem:[%s4034_s5 + $0x130] sm:$0xff]  ;;  %v1248_v31 = vld [vmem:[%s4034_s5 + $0x3e8] sm:$0xff] }
 0x26d   :  { %v3479_v52 = vmax.f32 %v2234_v47, 0.0  ;;  %v1014_v47 = vld [vmem:[%s4034_s5 + $0x158] sm:$0xff]  ;;  %v2095_v50 = vpack.c.bf16 %v1009_v45, %v1007_v44  ;;  %v1247_v45 = vld [vmem:[%s4034_s5 + $0x3e0] sm:$0xff] }
 0x26e   :  { %v1069_v56 = vrot.slane %v3471_v49, 2  ;;  %v2097_v51 = vpack.c.bf16 %v1014_v47, %v1012_v46  ;;  %v1249_v46 = vld [vmem:[%s4034_s5 + $0x3f0] sm:$0xff]  ;;  %v1252_v47 = vld [vmem:[%s4034_s5 + $0x408] sm:$0xff] }
 0x26f   :  { %v1070_v55 = vrot.slane %v3479_v52, 2  ;;  %v1268_v10 = vrot.slane %v3479_v52, 4 }
 0x271   :  { %1615 = vmatprep.mubr.msk.f32.mxu1 %vm1072_vm2, %v1070_v55  ;;  %v1016_v55 = vld [vmem:[%s4034_s5 + $0x168] sm:$0xff] }
 0x272   :  { %1140 = vmatmul.mubr.f32.vlgmr.msra.gmra.mrb[4].mxu1 %v1069_v56  ;;  %v2099_v56 = vpack.c.bf16 %v1013_v54, %v1011_v53  ;;  %v1251_v54 = vld [vmem:[%s4034_s5 + $0x400] sm:$0xff] }
 0x273   :  { %2060 = vmatpush1.bf16.msra.mxu1 %v2059_v7  ;;  %1616 = vmatprep.mubr.msk.f32.mxu1 %vm1072_vm2, %v3479_v52  ;;  %v1018_v7 = vld [vmem:[%s4034_s5 + $0x178] sm:$0xff] }
 0x274   :  { %2062 = vmatprep.subr.bf16.mxu1 %v2061_v57  ;;  %v2101_v57 = vpack.c.bf16 %v1018_v7, %v1016_v55  ;;  %v1253_v55 = vld [vmem:[%s4034_s5 + $0x410] sm:$0xff]  ;;  %v1256_v7 = vld [vmem:[%s4034_s5 + $0x428] sm:$0xff] }
 0x277   :  { %2064 = vmatpush1.bf16.msra.mxu1 %v2063_v62  ;;  %v2103_v62 = vpack.c.bf16 %v1017_v59, %v1015_v58  ;;  %v1255_v59 = vld [vmem:[%s4034_s5 + $0x420] sm:$0xff] }
 0x278   :  { %2066 = vmatprep.subr.bf16.mxu1 %v2065_v63  ;;  %v2105_v63 = vpack.c.bf16 %v1222_v61, %v1220_v60  ;;  %v1257_v60 = vld [vmem:[%s4034_s5 + $0x430] sm:$0xff]  ;;  %v1260_v61 = vld [vmem:[%s4034_s5 + $0x448] sm:$0xff] }
 0x27b   :  { %2068 = vmatpush1.bf16.msra.mxu1 %v2067_v5  ;;  %v2107_v5 = vpack.c.bf16 %v1221_v2, %v1219_v0  ;;  %v1259_v2 = vld [vmem:[%s4034_s5 + $0x440] sm:$0xff] }
 0x27c   :  { %2070 = vmatprep.subr.bf16.mxu1 %v2069_v6  ;;  %v2109_v6 = vpack.c.bf16 %v1226_v4, %v1224_v3  ;;  %v1261_v3 = vld [vmem:[%s4034_s5 + $0x450] sm:$0xff]  ;;  %v1264_v4 = vld [vmem:[%s4034_s5 + $0x468] sm:$0xff] }
 0x27f   :  { %2072 = vmatpush1.bf16.msra.mxu1 %v2071_v13  ;;  %v1230_v13 = vld [vmem:[%s4034_s5 + $0x358] sm:$0xff] }
 0x280   :  { %2074 = vmatprep.subr.bf16.mxu1 %v2073_v14  ;;  %v2111_v14 = vpack.c.bf16 %v1225_v9, %v1223_v8  ;;  %v2113_v15 = vpack.c.bf16 %v1230_v13, %v1228_v11  ;;  %v1263_v9 = vld [vmem:[%s4034_s5 + $0x460] sm:$0xff]  ;;  %v1346_v11 = vld [vmem:[%s4034_s5 + $0x488] sm:$0xff]  ;;  %v1348_v13 = vld [vmem:[%s4034_s5 + $0x498] sm:$0xff] }
 0x283   :  { %2076 = vmatpush1.bf16.msra.mxu1 %v2075_v18  ;;  %v1234_v18 = vld [vmem:[%s4034_s5 + $0x378] sm:$0xff] }
 0x284   :  { %2078 = vmatprep.subr.bf16.mxu1 %v2077_v19  ;;  %v2115_v19 = vpack.c.bf16 %v1229_v17, %v1227_v16  ;;  %v2117_v20 = vpack.c.bf16 %v1234_v18, %v1232_v40  ;;  %v1345_v16 = vld [vmem:[%s4034_s5 + $0x480] sm:$0xff]  ;;  %v1347_v17 = vld [vmem:[%s4034_s5 + $0x490] sm:$0xff]  ;;  %v1350_v40 = vld [vmem:[%s4034_s5 + $0x4a8] sm:$0xff] }
 0x285   :  { %v1352_v18 = vld [vmem:[%s4034_s5 + $0x4b8] sm:$0xff] }
 0x287   :  { %2080 = vmatpush1.bf16.msra.mxu1 %v2079_v24  ;;  %v1238_v24 = vld [vmem:[%s4034_s5 + $0x398] sm:$0xff] }
 0x288   :  { %2082 = vmatprep.subr.bf16.mxu1 %v2081_v25  ;;  %v2119_v25 = vpack.c.bf16 %v1233_v22, %v1231_v21  ;;  %v2121_v42 = vpack.c.bf16 %v1238_v24, %v1236_v23  ;;  %v2157_v21 = vpack.c.bf16 %v1352_v18, %v1350_v40  ;;  %v1349_v22 = vld [vmem:[%s4034_s5 + $0x4a0] sm:$0xff]  ;;  %v1351_v23 = vld [vmem:[%s4034_s5 + $0x4b0] sm:$0xff]  ;;  %v1394_v24 = vrot.slane %v3479_v52, 6  ;;  %v1390_v18 = vld [vmem:[%s4034_s5 + $0x5e8] sm:$0xff] }
 0x289   :  { %v1355_v52 = vld [vmem:[%s4034_s5 + $0x4d0] sm:$0xff] }
 0x28a   :  { %v1387_v40 = vld [vmem:[%s4034_s5 + $0x5d0] sm:$0xff] }
 0x28b   :  { %2084 = vmatpush1.bf16.msra.mxu1 %v2083_v48  ;;  %v1242_v48 = vld [vmem:[%s4034_s5 + $0x3b8] sm:$0xff] }
 0x28c   :  { %2086 = vmatprep.subr.bf16.mxu1 %v2085_v29  ;;  %v2123_v29 = vpack.c.bf16 %v1237_v27, %v1235_v26  ;;  %v2125_v30 = vpack.c.bf16 %v1242_v48, %v1240_v28  ;;  %v2159_v26 = vpack.c.bf16 %v1351_v23, %v1349_v22  ;;  %v1353_v28 = vld [vmem:[%s4034_s5 + $0x4c0] sm:$0xff]  ;;  %v1358_v48 = vld [vmem:[%s4034_s5 + $0x4e8] sm:$0xff]  ;;  %v1391_v23 = vld [vmem:[%s4034_s5 + $0x5f0] sm:$0xff] }
 0x28d   :  { %v1389_v22 = vld [vmem:[%s4034_s5 + $0x5e0] sm:$0xff] }
 0x28f   :  { %2088 = vmatpush1.bf16.msra.mxu1 %v2087_v35  ;;  %v1246_v35 = vld [vmem:[%s4034_s5 + $0x3d8] sm:$0xff] }
 0x290   :  { %2090 = vmatprep.subr.bf16.mxu1 %v2089_v36  ;;  %v2127_v36 = vpack.c.bf16 %v1241_v33, %v1239_v32  ;;  %v2129_v1 = vpack.c.bf16 %v1246_v35, %v1244_v12  ;;  %v1357_v33 = vld [vmem:[%s4034_s5 + $0x4e0] sm:$0xff]  ;;  %v1359_v12 = vld [vmem:[%s4034_s5 + $0x4f0] sm:$0xff]  ;;  %v1362_v35 = vld [vmem:[%s4034_s5 + $0x508] sm:$0xff] }
 0x293   :  { %2092 = vmatpush1.bf16.msra.mxu1 %v2091_v38  ;;  %v1250_v38 = vld [vmem:[%s4034_s5 + $0x3f8] sm:$0xff] }
 0x294   :  { %2094 = vmatprep.subr.bf16.mxu1 %v2093_v39  ;;  %v2131_v39 = vpack.c.bf16 %v1245_v37, %v1243_v34  ;;  %v2133_v44 = vpack.c.bf16 %v1250_v38, %v1248_v31  ;;  %v1361_v37 = vld [vmem:[%s4034_s5 + $0x500] sm:$0xff]  ;;  %v1363_v31 = vld [vmem:[%s4034_s5 + $0x510] sm:$0xff]  ;;  %v1366_v38 = vld [vmem:[%s4034_s5 + $0x528] sm:$0xff] }
 0x297   :  { %2096 = vmatpush1.bf16.msra.mxu1 %v2095_v50  ;;  %v1254_v50 = vld [vmem:[%s4034_s5 + $0x418] sm:$0xff] }
 0x298   :  { %2098 = vmatprep.subr.bf16.mxu1 %v2097_v51  ;;  %v2135_v51 = vpack.c.bf16 %v1249_v46, %v1247_v45  ;;  %v2137_v53 = vpack.c.bf16 %v1254_v50, %v1252_v47  ;;  %v1365_v46 = vld [vmem:[%s4034_s5 + $0x520] sm:$0xff]  ;;  %v1367_v47 = vld [vmem:[%s4034_s5 + $0x530] sm:$0xff]  ;;  %v1370_v50 = vld [vmem:[%s4034_s5 + $0x548] sm:$0xff] }
 0x29b   :  { %2100 = vmatpush1.bf16.msra.mxu1 %v2099_v56  ;;  %v1258_v56 = vld [vmem:[%s4034_s5 + $0x438] sm:$0xff] }
 0x29c   :  { %2102 = vmatprep.subr.bf16.mxu1 %v2101_v57  ;;  %v2139_v57 = vpack.c.bf16 %v1253_v55, %v1251_v54  ;;  %v2141_v58 = vpack.c.bf16 %v1258_v56, %v1256_v7  ;;  %v1369_v55 = vld [vmem:[%s4034_s5 + $0x540] sm:$0xff]  ;;  %v1371_v7 = vld [vmem:[%s4034_s5 + $0x550] sm:$0xff]  ;;  %v1374_v56 = vld [vmem:[%s4034_s5 + $0x568] sm:$0xff] }
 0x29f   :  { %2104 = vmatpush1.bf16.msra.mxu1 %v2103_v62  ;;  %v1262_v62 = vld [vmem:[%s4034_s5 + $0x458] sm:$0xff] }
 0x2a0   :  { %2106 = vmatprep.subr.bf16.mxu1 %v2105_v63  ;;  %v2143_v63 = vpack.c.bf16 %v1257_v60, %v1255_v59  ;;  %v2145_v0 = vpack.c.bf16 %v1262_v62, %v1260_v61  ;;  %v1373_v60 = vld [vmem:[%s4034_s5 + $0x560] sm:$0xff]  ;;  %v1375_v61 = vld [vmem:[%s4034_s5 + $0x570] sm:$0xff]  ;;  %v1378_v62 = vld [vmem:[%s4034_s5 + $0x588] sm:$0xff] }
 0x2a2   :  { %1213 = vmatmul.mubr.f32.vlgmr.msra.gmra.mrb[4].mxu1 %v3471_v49 }
 0x2a3   :  { %2108 = vmatpush1.bf16.msra.mxu1 %v2107_v5  ;;  %1617 = vmatprep.mubr.msk.f32.mxu1 %vm1072_vm2, %v1268_v10  ;;  %v1266_v5 = vld [vmem:[%s4034_s5 + $0x478] sm:$0xff]  ;;  %v1265_v10 = vld [vmem:[%s4034_s5 + $0x470] sm:$0xff] }
 0x2a4   :  { %2110 = vmatprep.subr.bf16.mxu1 %v2109_v6  ;;  %v2147_v6 = vpack.c.bf16 %v1261_v3, %v1259_v2  ;;  %v2149_v8 = vpack.c.bf16 %v1266_v5, %v1264_v4  ;;  %v1377_v3 = vld [vmem:[%s4034_s5 + $0x580] sm:$0xff]  ;;  %v1379_v4 = vld [vmem:[%s4034_s5 + $0x590] sm:$0xff]  ;;  %v1382_v5 = vld [vmem:[%s4034_s5 + $0x5a8] sm:$0xff] }
 0x2a7   :  { %2112 = vmatpush1.bf16.msra.mxu1 %v2111_v14  ;;  %v2151_v14 = vpack.c.bf16 %v1265_v10, %v1263_v9  ;;  %v1381_v10 = vld [vmem:[%s4034_s5 + $0x5a0] sm:$0xff] }
 0x2a8   :  { %2114 = vmatprep.subr.bf16.mxu1 %v2113_v15  ;;  %v2153_v15 = vpack.c.bf16 %v1348_v13, %v1346_v11  ;;  %v1383_v11 = vld [vmem:[%s4034_s5 + $0x5b0] sm:$0xff]  ;;  %v1386_v13 = vld [vmem:[%s4034_s5 + $0x5c8] sm:$0xff] }
 0x2ab   :  { %2116 = vmatpush1.bf16.msra.mxu1 %v2115_v19  ;;  %v2155_v19 = vpack.c.bf16 %v1347_v17, %v1345_v16  ;;  %v1385_v17 = vld [vmem:[%s4034_s5 + $0x5c0] sm:$0xff] }
 0x2ac   :  { %2118 = vmatprep.subr.bf16.mxu1 %v2117_v20  ;;  %v1267_v20 = vrot.slane %v3471_v49, 4 }
 0x2af   :  { %2120 = vmatpush1.bf16.msra.mxu1 %v2119_v25  ;;  %v1354_v25 = vld [vmem:[%s4034_s5 + $0x4c8] sm:$0xff] }
 0x2b0   :  { %2122 = vmatprep.subr.bf16.mxu1 %v2121_v42  ;;  %v1356_v42 = vld [vmem:[%s4034_s5 + $0x4d8] sm:$0xff] }
 0x2b1   :  { %v2161_v27 = vpack.c.bf16 %v1356_v42, %v1354_v25  ;;  %v1504_v25 = vld [vmem:[%s4036_s7 + $0x88] sm:$0xff]  ;;  %v2199_v42 = vpack.c.bf16 %v1391_v23, %v1389_v22  ;;  %v1619_v23 = vld [vmem:[%s4037_s8] ss:$0 sm:$0xff] }
 0x2b3   :  { %2124 = vmatpush1.bf16.msra.mxu1 %v2123_v29  ;;  %v1360_v29 = vld [vmem:[%s4034_s5 + $0x4f8] sm:$0xff] }
 0x2b4   :  { %2126 = vmatprep.subr.bf16.mxu1 %v2125_v30  ;;  %v2163_v30 = vpack.c.bf16 %v1355_v52, %v1353_v28  ;;  %v2165_v32 = vpack.c.bf16 %v1360_v29, %v1358_v48  ;;  %v1488_v28 = vld [vmem:[%s4036_s7 + $0x8] sm:$0xff]  ;;  %v1505_v52 = vld [vmem:[%s4036_s7 + $0x90] sm:$0xff]  ;;  %v1506_v48 = vld [vmem:[%s4036_s7 + $0x98] sm:$0xff] }
 0x2b7   :  { %2128 = vmatpush1.bf16.msra.mxu1 %v2127_v36  ;;  %v1364_v36 = vld [vmem:[%s4034_s5 + $0x518] sm:$0xff] }
 0x2b8   :  { %2130 = vmatprep.subr.bf16.mxu1 %v2129_v1  ;;  %v2167_v1 = vpack.c.bf16 %v1359_v12, %v1357_v33  ;;  %v2169_v34 = vpack.c.bf16 %v1364_v36, %v1362_v35  ;;  %v1489_v33 = vld [vmem:[%s4036_s7 + $0x10] sm:$0xff]  ;;  %v1490_v12 = vld [vmem:[%s4036_s7 + $0x18] sm:$0xff]  ;;  %v1507_v35 = vld [vmem:[%s4036_s7 + $0xa0] sm:$0xff] }
 0x2b9   :  { %v1508_v36 = vld [vmem:[%s4036_s7 + $0xa8] sm:$0xff] }
 0x2bb   :  { %2132 = vmatpush1.bf16.msra.mxu1 %v2131_v39  ;;  %v1368_v39 = vld [vmem:[%s4034_s5 + $0x538] sm:$0xff] }
 0x2bc   :  { %2134 = vmatprep.subr.bf16.mxu1 %v2133_v44  ;;  %v2171_v44 = vpack.c.bf16 %v1363_v31, %v1361_v37  ;;  %v2173_v45 = vpack.c.bf16 %v1368_v39, %v1366_v38  ;;  %v1492_v37 = vld [vmem:[%s4036_s7 + $0x28] sm:$0xff]  ;;  %v1509_v31 = vld [vmem:[%s4036_s7 + $0xb0] sm:$0xff]  ;;  %v1510_v38 = vld [vmem:[%s4036_s7 + $0xb8] sm:$0xff] }
 0x2bf   :  { %2136 = vmatpush1.bf16.msra.mxu1 %v2135_v51  ;;  %v1372_v51 = vld [vmem:[%s4034_s5 + $0x558] sm:$0xff] }
 0x2c0   :  { %2138 = vmatprep.subr.bf16.mxu1 %v2137_v53  ;;  %v2175_v53 = vpack.c.bf16 %v1367_v47, %v1365_v46  ;;  %v2177_v54 = vpack.c.bf16 %v1372_v51, %v1370_v50  ;;  %v1494_v46 = vld [vmem:[%s4036_s7 + $0x38] sm:$0xff]  ;;  %v1511_v47 = vld [vmem:[%s4036_s7 + $0xc0] sm:$0xff]  ;;  %v1512_v50 = vld [vmem:[%s4036_s7 + $0xc8] sm:$0xff] }
 0x2c3   :  { %2140 = vmatpush1.bf16.msra.mxu1 %v2139_v57  ;;  %v1376_v57 = vld [vmem:[%s4034_s5 + $0x578] sm:$0xff] }
 0x2c4   :  { %2142 = vmatprep.subr.bf16.mxu1 %v2141_v58  ;;  %v2179_v58 = vpack.c.bf16 %v1371_v7, %v1369_v55  ;;  %v2181_v59 = vpack.c.bf16 %v1376_v57, %v1374_v56  ;;  %v1496_v55 = vld [vmem:[%s4036_s7 + $0x48] sm:$0xff]  ;;  %v1513_v7 = vld [vmem:[%s4036_s7 + $0xd0] sm:$0xff]  ;;  %v1514_v56 = vld [vmem:[%s4036_s7 + $0xd8] sm:$0xff] }
 0x2c7   :  { %2144 = vmatpush1.bf16.msra.mxu1 %v2143_v63  ;;  %v1380_v63 = vld [vmem:[%s4034_s5 + $0x598] sm:$0xff] }
 0x2c8   :  { %2146 = vmatprep.subr.bf16.mxu1 %v2145_v0  ;;  %v2183_v0 = vpack.c.bf16 %v1375_v61, %v1373_v60  ;;  %v2185_v2 = vpack.c.bf16 %v1380_v63, %v1378_v62  ;;  %v1498_v60 = vld [vmem:[%s4036_s7 + $0x58] sm:$0xff]  ;;  %v1515_v61 = vld [vmem:[%s4036_s7 + $0xe0] sm:$0xff]  ;;  %v1516_v62 = vld [vmem:[%s4036_s7 + $0xe8] sm:$0xff] }
 0x2cb   :  { %2148 = vmatpush1.bf16.msra.mxu1 %v2147_v6  ;;  %v1384_v6 = vld [vmem:[%s4034_s5 + $0x5b8] sm:$0xff] }
 0x2cc   :  { %2150 = vmatprep.subr.bf16.mxu1 %v2149_v8  ;;  %v2187_v8 = vpack.c.bf16 %v1379_v4, %v1377_v3  ;;  %v2189_v9 = vpack.c.bf16 %v1384_v6, %v1382_v5  ;;  %v1500_v3 = vld [vmem:[%s4036_s7 + $0x68] sm:$0xff]  ;;  %v1517_v5 = vld [vmem:[%s4036_s7 + $0xf0] sm:$0xff]  ;;  %v1518_v6 = vld [vmem:[%s4036_s7 + $0xf8] sm:$0xff] }
 0x2cf   :  { %2152 = vmatpush1.bf16.msra.mxu1 %v2151_v14  ;;  %v1388_v14 = vld [vmem:[%s4034_s5 + $0x5d8] sm:$0xff] }
 0x2d0   :  { %2154 = vmatprep.subr.bf16.mxu1 %v2153_v15  ;;  %v2191_v15 = vpack.c.bf16 %v1383_v11, %v1381_v10  ;;  %v2193_v16 = vpack.c.bf16 %v1388_v14, %v1386_v13  ;;  %v1502_v10 = vld [vmem:[%s4036_s7 + $0x78] sm:$0xff]  ;;  %v1471_v13 = vld [vmem:[%s4035_s6] sm:$0x3]  ;;  %s1603_s6 = sshll.u32 %s2278_s3, 4  ;;  %s1604_s6 = int_to_ptr.vmem [resolvable:$true] %s1603_s6 }
 0x2d1   :  { %v1476_v14 = vrot.slane %v1471_v13, %v2805_v41  ;;  %s2251_s20 = scalar_lea.vmem %s1604_s6, 32  ;;  %p2256_p1 = scmp.lt.s32.totalorder %s1604_s6, %s1604_s6 }
 0x2d2   :  { %1337 = vmatmul.mubr.f32.vlgmr.msra.gmra.mrb[4].mxu1 %v1267_v20  ;;  %v2195_v20 = vpack.c.bf16 %v1387_v40, %v1385_v17  ;;  %p2252_p0 = scmp.ne.s32.totalorder %s1604_s6, %s2251_s20  ;;  %p2257_p2 = scmp.lt.s32.totalorder %s2251_s20, %s2251_s20 }
 0x2d3   :  { %2156 = vmatpush1.bf16.msra.mxu1 %v2155_v19  ;;  %1618 = vmatprep.mubr.msk.f32.mxu1 %vm1072_vm2, %v1394_v24  ;;  %v1392_v19 = vld [vmem:[%s4034_s5 + $0x5f8] sm:$0xff]  ;;  %v1503_v24 = vld [vmem:[%s4036_s7 + $0x80] sm:$0xff] }
 0x2d4   :  { %2158 = vmatprep.subr.bf16.mxu1 %v2157_v21  ;;  %v2197_v21 = vpack.c.bf16 %v1392_v19, %v1390_v18  ;;  %p2258_p3 = por %p2257_p2, %p2256_p1 }
 0x2d6   :  { %p2259_p4 = pnand %p2258_p3, %p2252_p0 }
 0x2d7   :  { %2160 = vmatpush1.bf16.msra.mxu1 %v2159_v26  ;;  %v2201_v26 = vpack.c.bf16 %v1504_v25, %v1503_v24 }
 0x2d8   :  { %2162 = vmatprep.subr.bf16.mxu1 %v2161_v27  ;;  %v1487_v27 = vld [vmem:[%s4036_s7] sm:$0xff] }
 0x2d9   :  { %v2203_v29 = vpack.c.bf16 %v1488_v28, %v1487_v27 }
 0x2db   :  { %2164 = vmatpush1.bf16.msra.mxu1 %v2163_v30  ;;  %v1393_v30 = vrot.slane %v3471_v49, 6  ;;  %v2207_v49 = vpack.c.bf16 %v1490_v12, %v1489_v33 }
 0x2dc   :  { %2166 = vmatprep.subr.bf16.mxu1 %v2165_v32  ;;  %v2205_v32 = vpack.c.bf16 %v1506_v48, %v1505_v52 }
 0x2df   :  { %2168 = vmatpush1.bf16.msra.mxu1 %v2167_v1  ;;  %v2209_v1 = vpack.c.bf16 %v1508_v36, %v1507_v35 }
 0x2e0   :  { %2170 = vmatprep.subr.bf16.mxu1 %v2169_v34  ;;  %v1491_v34 = vld [vmem:[%s4036_s7 + $0x20] sm:$0xff] }
 0x2e1   :  { %v2211_v39 = vpack.c.bf16 %v1492_v37, %v1491_v34 }
 0x2e3   :  { %2172 = vmatpush1.bf16.msra.mxu1 %v2171_v44  ;;  %v2213_v44 = vpack.c.bf16 %v1510_v38, %v1509_v31 }
 0x2e4   :  { %2174 = vmatprep.subr.bf16.mxu1 %v2173_v45  ;;  %v1493_v45 = vld [vmem:[%s4036_s7 + $0x30] sm:$0xff] }
 0x2e5   :  { %v2215_v51 = vpack.c.bf16 %v1494_v46, %v1493_v45 }
 0x2e7   :  { %2176 = vmatpush1.bf16.msra.mxu1 %v2175_v53  ;;  %v2217_v53 = vpack.c.bf16 %v1512_v50, %v1511_v47 }
 0x2e8   :  { %2178 = vmatprep.subr.bf16.mxu1 %v2177_v54  ;;  %v1495_v54 = vld [vmem:[%s4036_s7 + $0x40] sm:$0xff] }
 0x2e9   :  { %v2219_v57 = vpack.c.bf16 %v1496_v55, %v1495_v54 }
 0x2eb   :  { %2180 = vmatpush1.bf16.msra.mxu1 %v2179_v58  ;;  %v2221_v58 = vpack.c.bf16 %v1514_v56, %v1513_v7 }
 0x2ec   :  { %2182 = vmatprep.subr.bf16.mxu1 %v2181_v59  ;;  %v1497_v59 = vld [vmem:[%s4036_s7 + $0x50] sm:$0xff] }
 0x2ed   :  { %v2223_v63 = vpack.c.bf16 %v1498_v60, %v1497_v59 }
 0x2ef   :  { %2184 = vmatpush1.bf16.msra.mxu1 %v2183_v0  ;;  %v2225_v0 = vpack.c.bf16 %v1516_v62, %v1515_v61 }
 0x2f0   :  { %2186 = vmatprep.subr.bf16.mxu1 %v2185_v2  ;;  %v1499_v2 = vld [vmem:[%s4036_s7 + $0x60] sm:$0xff] }
 0x2f1   :  { %v2227_v4 = vpack.c.bf16 %v1500_v3, %v1499_v2 }
 0x2f3   :  { %2188 = vmatpush1.bf16.msra.mxu1 %v2187_v8  ;;  %v2229_v8 = vpack.c.bf16 %v1518_v6, %v1517_v5 }
 0x2f4   :  { %2190 = vmatprep.subr.bf16.mxu1 %v2189_v9  ;;  %v1501_v9 = vld [vmem:[%s4036_s7 + $0x70] sm:$0xff] }
 0x2f5   :  { %v2231_v11 = vpack.c.bf16 %v1502_v10, %v1501_v9 }
 0x2f7   :  { %2192 = vmatpush1.bf16.msra.mxu1 %v2191_v15  ;;  %v1480_v15 = vrot.slane %v1471_v13, %v2813_v43 }
 0x2f8   :  { %2194 = vmatprep.subr.bf16.mxu1 %v2193_v16 }
 0x2fb   :  { %2196 = vmatpush1.bf16.msra.mxu1 %v2195_v20 }
 0x2fc   :  { %2198 = vmatprep.subr.bf16.mxu1 %v2197_v21 }
 0x2ff   :  { %2200 = vmatpush1.bf16.msra.mxu1 %v2199_v42 }
 0x300   :  { %2202 = vmatprep.subr.bf16.mxu1 %v2201_v26 }
 0x302   :  { %1463 = vmatmul.mubr.f32.vlgmr.msra.gmra.mrb[4].mxu1 %v1393_v30 }
 0x303   :  { %2204 = vmatpush3.bf16.msra.mxu1 %v2203_v29 }
 0x304   :  { %2206 = vmatprep.subr.bf16.mxu1 %v2205_v32 }
 0x307   :  { %2208 = vmatpush3.bf16.msra.mxu1 %v2207_v49 }
 0x308   :  { %2210 = vmatprep.subr.bf16.mxu1 %v2209_v1 }
 0x30b   :  { %2212 = vmatpush3.bf16.msra.mxu1 %v2211_v39 }
 0x30c   :  { %2214 = vmatprep.subr.bf16.mxu1 %v2213_v44 }
 0x30f   :  { %2216 = vmatpush3.bf16.msra.mxu1 %v2215_v51 }
 0x310   :  { %2218 = vmatprep.subr.bf16.mxu1 %v2217_v53 }
 0x313   :  { %2220 = vmatpush3.bf16.msra.mxu1 %v2219_v57 }
 0x314   :  { %2222 = vmatprep.subr.bf16.mxu1 %v2221_v58 }
 0x317   :  { %2224 = vmatpush3.bf16.msra.mxu1 %v2223_v63 }
 0x318   :  { %2226 = vmatprep.subr.bf16.mxu1 %v2225_v0 }
 0x31b   :  { %2228 = vmatpush3.bf16.msra.mxu1 %v2227_v4 }
 0x31c   :  { %2230 = vmatprep.subr.bf16.mxu1 %v2229_v8 }
 0x31f   :  { %2232 = vmatpush3.bf16.msra.mxu1 %v2231_v11 }
 0x3d5   :  { %v1464_v16 = vpop.f32.mrb[4].mxu1 }
 0x3d6   :  { %v1483_v17 = vadd.f32 %v1476_v14, %v1464_v16  ;;  %v1466_v40 = vpop.f32.mrb[5].mxu1 }
 0x3d7   :  { %v1484_v18 = vadd.f32 %v1480_v15, %v1466_v40 }
 0x3d8   :  { %v1485_v20 = vmax.f32 %v1483_v17, 0.0 }
 0x3d9   :  { %v1486_v19 = vmax.f32 %v1484_v18, 0.0 }
 0x3db   :  { %1590 = vmatprep.mubr.f32.mxu1 %v1486_v19 }
 0x3dc   :  { %1591 = vmatmul.mubr.f32.vlgmr.msra.gmra.mrb[6].mxu1 %v1485_v20 }
 0x4af   :  { %v1665_v21 = vpop.f32.mrb[6].mxu1 }
 0x4b0   :  { %v1666_v22 = vpop.f32.mrb[7].mxu1 }
 0x4b1   :  { %v1667_v24 = vadd.f32 %v1666_v22, %v1665_v21 }
 0x4b3   :  { %v1593_v41 = vadd.f32 %v1667_v24, %v1619_v23 }
 0x4b5   :  { %1596 = vst [vmem:[#allocation2] sm:$0x3] %v1593_v41 }
 0x4b6   :  { %2262 = shalt.err (!%p2259_p4)
}
 0x4b7   :  { %s2263_s23 = scalar_lea.hbm %s4038_s9, 32 }
 0x4b8   :  { %p2264_p5 = scmp.ne.s32.totalorder %s4038_s9, %s2263_s23  ;;  %p2267_p6 = scmp.lt.u32.totalorder %s2263_s23, %s4038_s9 }
 0x4ba   :  { %p2269_p7 = pnand %p2267_p6, %p2264_p5 }
 0x4bc   :  { %2272 = shalt.err (!%p2269_p7)
}
 0x4bd   :  { %1606 = dma.vmem_to_hbm [thread:$0]  %s1604_s6, 32, %s4038_s9, [#allocation3]  }
 0x4be   :  { %2273 = dma.done.wait [#allocation3], 32  }
 0x4bf   :  { %2274 = vsyncadd [#allocation3], 4294967264 }
 0x4c0   :  { %1610 = vsyncpa [#allocation3], 1 }

</bundles_post_ra>
